<compile_context>
chip_gen: v7x
topology: tpu7x:2x2x1
jax: 0.10.0
libtpu: 0.0.40
codegen_flags: <defaults>
</compile_context>

<pallas_src>
import numpy as np
import jax
import jax.numpy as jnp
from jax.experimental import pallas as pl
from jax.experimental.pallas import tpu as pltpu

N_COMP = 12                   # PCA components / conv depth
PATCH = 5
NPIX = PATCH * PATCH          # 25 unique pixels per (depth, batch) row
K = 3                         # conv spatial kernel
N_POS = K * K                 # 9 conv1 output spatial positions
C1 = 3 * N_COMP               # 36  conv1 out channels
C2 = 9 * N_COMP               # 108 conv2 out channels
FC1 = 6 * N_COMP              # 72
FEATS = C2 * N_COMP           # 1296 = torch features_size
H1_PAD = 384                  # conv1 output width 9*36=324 -> 3 full lane tiles
C2_PAD = 128                  # conv2 channels padded to one lane tile
FC1_PAD = 128                 # fc1 width padded to one lane tile
FLAT_PAD = N_COMP * C2_PAD    # 1536 padded flatten width
MXU_DTYPE = jnp.bfloat16      # MXU-native on v5e/v6e/v7x; accumulation stays f32


def _round_up(n, m):
    return ((n + m - 1) // m) * m


# --------------------------------------------------------------------------- kernel
def _karank_kernel(patches_ref, w1_ref, b1_ref, w2_ref, b2_ref,
                   wfc1_ref, bfc1_ref, wfc2_ref, bfc2_ref, out_ref):
    nb = patches_ref.shape[1]                 # batch tile (multiple of 16)

    # (N_COMP, nb, 25) bf16 -> (N_COMP*nb, 25): layout-preserving leading-dim merge
    # (nb % 16 == 0 matches the bf16 (16, 128) sublane packing).
    x = patches_ref[...].reshape(N_COMP * nb, NPIX)

    # conv1: all 9 window positions in ONE matmul via the (25, 384) tap-scatter
    # weight; bias+ReLU+bf16 cast fused so only the bf16 h1 stays live.
    h1 = jnp.dot(x, w1_ref[...], preferred_element_type=jnp.float32)
    h1 = jnp.maximum(h1 + b1_ref[...], 0.0).astype(MXU_DTYPE)       # (12*nb, 384)

    # conv2: single matmul, contraction over (position, channel); lanes 108 -> 128.
    h2 = jnp.dot(h1, w2_ref[...], preferred_element_type=jnp.float32)
    h2 = jnp.maximum(h2 + b2_ref[...], 0.0).astype(MXU_DTYPE)       # (12*nb, 128)

    # fc1 as an accumulation over depth: rows are d-major (row = d*nb + b), so the
    # torch (o2, d) flatten order is absorbed into the pre-permuted fc1 weight rows
    # and no (nb, 1536) flatten intermediate is ever materialized.
    o1 = jnp.zeros((nb, FC1_PAD), jnp.float32)
    for d in range(N_COMP):
        o1 = o1 + jnp.dot(h2[d * nb:(d + 1) * nb, :],
                          wfc1_ref[d * C2_PAD:(d + 1) * C2_PAD, :],
                          preferred_element_type=jnp.float32)
    o1 = o1 + bfc1_ref[...]                                         # (nb, 128)

    # fc2: n_classes padded to a full lane tile -> unmasked final store.
    out_ref[...] = jnp.dot(o1.astype(MXU_DTYPE), wfc2_ref[...],
                           preferred_element_type=jnp.float32) + bfc2_ref[...]


# ------------------------------------------------------------------------ host glue
def _pca_project(x):
    """x: (B, 1, C_bands, 5, 5) -> z: (B, N_COMP, 5, 5).

    Mirrors the torch loop's raw .view() reinterpretations; a batched eigh on the
    (C x C) covariance replaces the per-sample randomized SVD loop.
    """
    b, _, c, h, w = x.shape
    y = x.reshape(b, h * w, c)                     # == torch squeeze + .view(-1, C)
    yc = y - jnp.mean(y, axis=1, keepdims=True)
    cov = jnp.einsum('bnc,bnd->bcd', yc, yc)
    # TODO(synk): torch.pca_lowrank is a *randomized* SVD (niter=3); eigh of the
    # centered covariance gives the same subspace up to component sign/order.
    _, vecs = jnp.linalg.eigh(cov)                 # ascending eigenvalues
    v = vecs[:, :, ::-1][:, :, :N_COMP]            # (B, C, N_COMP) top components
    z = jnp.einsum('bnc,bck->bnk', y, v)           # project the *uncentered* y
    return z.reshape(b, N_COMP, PATCH, PATCH).astype(jnp.float32)


def _prep_patches(z, b_pad):
    """z: (B, N_COMP, 5, 5) -> patches: (N_COMP, b_pad, 25) bf16, pixel q = i*5+j."""
    b = z.shape[0]
    if b_pad > b:
        z = jnp.pad(z, ((0, b_pad - b), (0, 0), (0, 0), (0, 0)))
    p = jnp.transpose(z.reshape(b_pad, N_COMP, NPIX), (1, 0, 2))
    return p.astype(MXU_DTYPE)                     # bf16 stream halves input DMA


def init_params(key, n_classes):
    """Deterministic torch-layout params + MXU-friendly repacked kernel params."""
    ks = jax.random.split(key, 8)

    def u(k, shape, fan_in):
        b = 1.0 / (fan_in ** 0.5)
        return jax.random.uniform(k, shape, jnp.float32, -b, b)

    w1 = u(ks[0], (C1, 1, 1, K, K), 1 * K * K)          # Conv3d weight layout
    b1 = u(ks[1], (C1,), 1 * K * K)
    w2 = u(ks[2], (C2, C1, 1, K, K), C1 * K * K)
    b2 = u(ks[3], (C2,), C1 * K * K)
    wfc1 = u(ks[4], (FC1, FEATS), FEATS)                # Linear: (out, in)
    bfc1 = u(ks[5], (FC1,), FEATS)
    wfc2 = u(ks[6], (n_classes, FC1), FC1)
    bfc2 = u(ks[7], (n_classes,), FC1)
    torch_params = (w1, b1, w2, b2, wfc1, bfc1, wfc2, bfc2)

    n_pad = max(128, _round_up(n_classes, 128))

    # conv1: (25, 384) tap-scatter weight. Column p*C1 + o holds w1[o]'s 3x3 taps
    # scattered to the pixel indices of window position p; columns 324..383 zero.
    w1_k = np.asarray(w1).reshape(C1, K, K)
    w1_tap = np.zeros((NPIX, H1_PAD), np.float32)
    for p in range(N_POS):
        i0, j0 = divmod(p, K)
        for di in range(K):
            for dj in range(K):
                q = (i0 + di) * PATCH + (j0 + dj)
                w1_tap[q, p * C1:(p + 1) * C1] = w1_k[:, di, dj]
    b1_t = np.zeros((1, H1_PAD), np.float32)
    b1_t[0, :N_POS * C1] = np.tile(np.asarray(b1), N_POS)

    # conv2: rows ordered position-major then channel, padded 324 -> 384 rows and
    # 108 -> 128 lanes so h1/h2 are whole lane tiles.
    w2_m = jnp.transpose(w2.reshape(C2, C1, N_POS), (2, 1, 0)).reshape(N_POS * C1, C2)
    w2_p = jnp.pad(w2_m, ((0, H1_PAD - N_POS * C1), (0, C2_PAD - C2)))   # (384, 128)
    b2_p = jnp.pad(b2, (0, C2_PAD - C2)).reshape(1, C2_PAD)

    # fc1: rows permuted from torch feature order (o2*12 + d) to (d*128 + o2),
    # zero rows for padded o2 lanes, zero cols for the 72 -> 128 output pad.
    wfc1_m = jnp.transpose(wfc1.T.reshape(C2, N_COMP, FC1), (1, 0, 2))   # (12,108,72)
    wfc1_p = jnp.pad(wfc1_m, ((0, 0), (0, C2_PAD - C2),
                              (0, FC1_PAD - FC1))).reshape(FLAT_PAD, FC1_PAD)
    bfc1_p = jnp.pad(bfc1, (0, FC1_PAD - FC1)).reshape(1, FC1_PAD)

    # fc2: rows padded 72 -> 128 (zeros), cols padded to a full lane tile.
    wfc2_p = jnp.pad(wfc2.T, ((0, FC1_PAD - FC1), (0, n_pad - n_classes)))
    bfc2_p = jnp.pad(bfc2, (0, n_pad - n_classes)).reshape(1, n_pad)

    to_mxu = lambda a: jnp.asarray(a).astype(MXU_DTYPE)
    kernel_params = (to_mxu(w1_tap), jnp.asarray(b1_t), to_mxu(w2_p), b2_p,
                     to_mxu(wfc1_p), bfc1_p, to_mxu(wfc2_p), bfc2_p)
    return torch_params, kernel_params


def karank_forward(x, kernel_params, n_classes, block_b=None):
    """x: (B, 1, C_bands, 5, 5) float32 (NCDHW, like the torch module)."""
    batch = x.shape[0]
    if block_b is None:
        # >= 2 grid steps when the batch allows it (keeps both v7x TCs busy);
        # cap at 256 rows/tile. v5e/v6e (128 MiB VMEM) may pass block_b=512.
        half = -(-batch // 2)
        block_b = max(16, min(256, _round_up(half, 16)))
    block_b = _round_up(block_b, 16)             # bf16 sublane packing (16, 128)
    b_pad = _round_up(batch, block_b)

    (w1_tap, b1_t, w2_p, b2_p, wfc1_p, bfc1_p, wfc2_p, bfc2_p) = kernel_params
    n_pad = bfc2_p.shape[-1]

    z = _pca_project(x)                          # (B, N_COMP, 5, 5)        glue
    patches = _prep_patches(z, b_pad)            # (N_COMP, b_pad, 25) bf16 glue

    def full(a):                                 # weights stay VMEM-resident
        return pl.BlockSpec(a.shape, lambda i: (0,) * a.ndim)

    out = pl.pallas_call(
        _karank_kernel,
        out_shape=jax.ShapeDtypeStruct((b_pad, n_pad), jnp.float32),
        grid_spec=pltpu.PrefetchScalarGridSpec(
            num_scalar_prefetch=0,
            grid=(b_pad // block_b,),
            in_specs=[
                pl.BlockSpec((N_COMP, block_b, NPIX), lambda i: (0, i, 0)),
                full(w1_tap), full(b1_t), full(w2_p), full(b2_p),
                full(wfc1_p), full(bfc1_p), full(wfc2_p), full(bfc2_p),
            ],
            out_specs=pl.BlockSpec((block_b, n_pad), lambda i: (i, 0)),
        ),
        compiler_params=pltpu.CompilerParams(
            dimension_semantics=("parallel",),        # megacore split on v7x
            vmem_limit_bytes=32 * 1024 * 1024,
        ),
    )(patches, w1_tap, b1_t, w2_p, b2_p, wfc1_p, bfc1_p, wfc2_p, bfc2_p)
    return out[:batch, :n_classes]


# ----------------------------------------------------------------------- references
def reference_forward(z, torch_params):
    """Plain-JAX f32 reference of the conv/fc path (torch-layout weights)."""
    w1, b1, w2, b2, wfc1, bfc1, wfc2, bfc2 = torch_params
    b = z.shape[0]
    out1 = jnp.zeros((b, C1, N_COMP, K, K), jnp.float32)
    for ki in range(K):
        for kj in range(K):
            out1 = out1 + jnp.einsum('bdij,o->bodij',
                                     z[:, :, ki:ki + K, kj:kj + K],
                                     w1[:, 0, 0, ki, kj])
    out1 = jax.nn.relu(out1 + b1[None, :, None, None, None])
    out2 = jnp.einsum('bcdij,ocij->bod', out1, w2[:, :, 0]) + b2[None, :, None]
    out2 = jax.nn.relu(out2)
    feats = out2.reshape(b, -1)                  # (o2, d) == torch .view(-1, 1296)
    o1 = feats @ wfc1.T + bfc1
    return o1 @ wfc2.T + bfc2


def packed_reference(patches, kernel_params):
    """Plain-JAX mirror of the kernel math (bf16 MXU inputs, f32 accumulation)."""
    w1_tap, b1_t, w2_p, b2_p, wfc1_p, bfc1_p, wfc2_p, bfc2_p = kernel_params
    n, nb, _ = patches.shape
    x = patches.reshape(n * nb, NPIX)
    h1 = jnp.maximum(jnp.dot(x, w1_tap, preferred_element_type=jnp.float32) + b1_t,
                     0.0).astype(MXU_DTYPE)
    h2 = jnp.maximum(jnp.dot(h1, w2_p, preferred_element_type=jnp.float32) + b2_p,
                     0.0).astype(MXU_DTYPE)
    o1 = jnp.zeros((nb, FC1_PAD), jnp.float32)
    for d in range(N_COMP):
        o1 = o1 + jnp.dot(h2[d * nb:(d + 1) * nb], wfc1_p[d * C2_PAD:(d + 1) * C2_PAD],
                          preferred_element_type=jnp.float32)
    o1 = o1 + bfc1_p
    return jnp.dot(o1.astype(MXU_DTYPE), wfc2_p,
                   preferred_element_type=jnp.float32) + bfc2_p


if __name__ == "__main__":
    n_classes = 10
    c_bands = 16
    batch = 2

    key = jax.random.PRNGKey(0)
    kx, kp, kx2 = jax.random.split(key, 3)
    x = jax.random.normal(kx, (batch, 1, c_bands, PATCH, PATCH), jnp.float32)
    torch_params, kernel_params = init_params(kp, n_classes)

    fwd = jax.jit(lambda xx: karank_forward(xx, kernel_params, n_classes))
    out = jax.block_until_ready(fwd(x))
    assert out.shape == (batch, n_classes)

    # Tight check vs a plain-JAX mirror of the packed (bf16-input) kernel math.
    z = _pca_project(x)
    packed = packed_reference(_prep_patches(z, _round_up(batch, 16)),
                              kernel_params)[:batch, :n_classes]
    assert jnp.allclose(out, packed, rtol=2e-2, atol=2e-2), (out, packed)

    # Loose check vs the f32 torch-layout reference (bf16 MXU rounding only).
    ref = reference_forward(z, torch_params)
    assert jnp.allclose(out, ref, rtol=1e-1, atol=1e-1), (out, ref)

    # Exercise the batch grid: padding + multiple tiles + parallel grid axis.
    batch2 = 20
    x2 = jax.random.normal(kx2, (batch2, 1, c_bands, PATCH, PATCH), jnp.float32)
    fwd2 = jax.jit(lambda xx: karank_forward(xx, kernel_params, n_classes, block_b=16))
    out2 = jax.block_until_ready(fwd2(x2))
    ref2 = reference_forward(_pca_project(x2), torch_params)
    assert out2.shape == (batch2, n_classes)
    assert jnp.allclose(out2, ref2, rtol=1e-1, atol=1e-1), (out2, ref2)

    print("KERNEL_OK")
</pallas_src>

<mosaic_0001>
module attributes {stable_mosaic.version = 11 : i64} {
  func.func @_karank_kernel(%arg0: i32, %arg1: memref<12x16x25xbf16, #tpu.memory_space<vmem>>, %arg2: memref<25x384xbf16, #tpu.memory_space<vmem>>, %arg3: memref<1x384xf32, #tpu.memory_space<vmem>>, %arg4: memref<384x128xbf16, #tpu.memory_space<vmem>>, %arg5: memref<1x128xf32, #tpu.memory_space<vmem>>, %arg6: memref<1536x128xbf16, #tpu.memory_space<vmem>>, %arg7: memref<1x128xf32, #tpu.memory_space<vmem>>, %arg8: memref<128x128xbf16, #tpu.memory_space<vmem>>, %arg9: memref<1x128xf32, #tpu.memory_space<vmem>>, %arg10: memref<16x128xf32, #tpu.memory_space<vmem>>) attributes {dimension_semantics = [#tpu.dimension_semantics<parallel>], iteration_bounds = array<i64: 1>, scalar_prefetch = 0 : i64, scratch_operands = 0 : i64, tpu.core_type = #tpu.core_type<tc>, window_params = [{transform_indices = @transform_0, window_bounds = array<i64: 12, 16, 25>}, {pipeline_mode = #tpu.pipeline_mode<synchronous>, transform_indices = @transform_1, window_bounds = array<i64: 25, 384>}, {pipeline_mode = #tpu.pipeline_mode<synchronous>, transform_indices = @transform_2, window_bounds = array<i64: 1, 384>}, {pipeline_mode = #tpu.pipeline_mode<synchronous>, transform_indices = @transform_3, window_bounds = array<i64: 384, 128>}, {pipeline_mode = #tpu.pipeline_mode<synchronous>, transform_indices = @transform_4, window_bounds = array<i64: 1, 128>}, {pipeline_mode = #tpu.pipeline_mode<synchronous>, transform_indices = @transform_5, window_bounds = array<i64: 1536, 128>}, {pipeline_mode = #tpu.pipeline_mode<synchronous>, transform_indices = @transform_6, window_bounds = array<i64: 1, 128>}, {pipeline_mode = #tpu.pipeline_mode<synchronous>, transform_indices = @transform_7, window_bounds = array<i64: 128, 128>}, {pipeline_mode = #tpu.pipeline_mode<synchronous>, transform_indices = @transform_8, window_bounds = array<i64: 1, 128>}, {transform_indices = @transform_9, window_bounds = array<i64: 16, 128>}]} {
    %c0 = arith.constant 0 : index
    %c0_0 = arith.constant 0 : index
    %c0_1 = arith.constant 0 : index
    %0 = vector.load %arg1[%c0, %c0_0, %c0_1] : memref<12x16x25xbf16, #tpu.memory_space<vmem>>, vector<12x16x25xbf16>
    %1 = vector.shape_cast %0 : vector<12x16x25xbf16> to vector<192x25xbf16>
    %c0_2 = arith.constant 0 : index
    %c0_3 = arith.constant 0 : index
    %2 = vector.load %arg2[%c0_2, %c0_3] : memref<25x384xbf16, #tpu.memory_space<vmem>>, vector<25x384xbf16>
    %cst = arith.constant dense<0.000000e+00> : vector<192x384xf32>
    %3 = tpu.matmul %1, %2, %cst {dimension_numbers = #tpu.dot_dimension_numbers<[1], [0], [0], [1], [0, 0, 1, 1], [], []>} : vector<192x25xbf16>, vector<25x384xbf16>, vector<192x384xf32> -> vector<192x384xf32>
    %c0_4 = arith.constant 0 : index
    %c0_5 = arith.constant 0 : index
    %4 = vector.load %arg3[%c0_4, %c0_5] : memref<1x384xf32, #tpu.memory_space<vmem>>, vector<1x384xf32>
    %5 = vector.broadcast %4 : vector<1x384xf32> to vector<192x384xf32>
    %6 = arith.addf %3, %5 : vector<192x384xf32>
    %cst_6 = arith.constant 0.000000e+00 : f32
    %7 = vector.broadcast %cst_6 : f32 to vector<192x384xf32>
    %8 = arith.maximumf %6, %7 : vector<192x384xf32>
    %9 = arith.truncf %8 : vector<192x384xf32> to vector<192x384xbf16>
    %c0_7 = arith.constant 0 : index
    %c0_8 = arith.constant 0 : index
    %10 = vector.load %arg4[%c0_7, %c0_8] : memref<384x128xbf16, #tpu.memory_space<vmem>>, vector<384x128xbf16>
    %cst_9 = arith.constant dense<0.000000e+00> : vector<192x128xf32>
    %11 = tpu.matmul %9, %10, %cst_9 {dimension_numbers = #tpu.dot_dimension_numbers<[1], [0], [0], [1], [0, 0, 1, 1], [], []>} : vector<192x384xbf16>, vector<384x128xbf16>, vector<192x128xf32> -> vector<192x128xf32>
    %c0_10 = arith.constant 0 : index
    %c0_11 = arith.constant 0 : index
    %12 = vector.load %arg5[%c0_10, %c0_11] : memref<1x128xf32, #tpu.memory_space<vmem>>, vector<1x128xf32>
    %13 = vector.broadcast %12 : vector<1x128xf32> to vector<192x128xf32>
    %14 = arith.addf %11, %13 : vector<192x128xf32>
    %cst_12 = arith.constant 0.000000e+00 : f32
    %15 = vector.broadcast %cst_12 : f32 to vector<192x128xf32>
    %16 = arith.maximumf %14, %15 : vector<192x128xf32>
    %17 = arith.truncf %16 : vector<192x128xf32> to vector<192x128xbf16>
    %cst_13 = arith.constant 0.000000e+00 : f32
    %18 = vector.broadcast %cst_13 : f32 to vector<16x128xf32>
    %19 = vector.extract_strided_slice %17 {offsets = [0, 0], sizes = [16, 128], strides = [1, 1]} : vector<192x128xbf16> to vector<16x128xbf16>
    %c0_14 = arith.constant 0 : index
    %c0_15 = arith.constant 0 : index
    %20 = vector.load %arg6[%c0_14, %c0_15] : memref<1536x128xbf16, #tpu.memory_space<vmem>>, vector<128x128xbf16>
    %cst_16 = arith.constant dense<0.000000e+00> : vector<16x128xf32>
    %21 = tpu.matmul %19, %20, %cst_16 {dimension_numbers = #tpu.dot_dimension_numbers<[1], [0], [0], [1], [0, 0, 1, 1], [], []>} : vector<16x128xbf16>, vector<128x128xbf16>, vector<16x128xf32> -> vector<16x128xf32>
    %22 = arith.addf %18, %21 : vector<16x128xf32>
    %23 = vector.extract_strided_slice %17 {offsets = [16, 0], sizes = [16, 128], strides = [1, 1]} : vector<192x128xbf16> to vector<16x128xbf16>
    %c128 = arith.constant 128 : index
    %c0_17 = arith.constant 0 : index
    %24 = vector.load %arg6[%c128, %c0_17] : memref<1536x128xbf16, #tpu.memory_space<vmem>>, vector<128x128xbf16>
    %cst_18 = arith.constant dense<0.000000e+00> : vector<16x128xf32>
    %25 = tpu.matmul %23, %24, %cst_18 {dimension_numbers = #tpu.dot_dimension_numbers<[1], [0], [0], [1], [0, 0, 1, 1], [], []>} : vector<16x128xbf16>, vector<128x128xbf16>, vector<16x128xf32> -> vector<16x128xf32>
    %26 = arith.addf %22, %25 : vector<16x128xf32>
    %27 = vector.extract_strided_slice %17 {offsets = [32, 0], sizes = [16, 128], strides = [1, 1]} : vector<192x128xbf16> to vector<16x128xbf16>
    %c256 = arith.constant 256 : index
    %c0_19 = arith.constant 0 : index
    %28 = vector.load %arg6[%c256, %c0_19] : memref<1536x128xbf16, #tpu.memory_space<vmem>>, vector<128x128xbf16>
    %cst_20 = arith.constant dense<0.000000e+00> : vector<16x128xf32>
    %29 = tpu.matmul %27, %28, %cst_20 {dimension_numbers = #tpu.dot_dimension_numbers<[1], [0], [0], [1], [0, 0, 1, 1], [], []>} : vector<16x128xbf16>, vector<128x128xbf16>, vector<16x128xf32> -> vector<16x128xf32>
    %30 = arith.addf %26, %29 : vector<16x128xf32>
    %31 = vector.extract_strided_slice %17 {offsets = [48, 0], sizes = [16, 128], strides = [1, 1]} : vector<192x128xbf16> to vector<16x128xbf16>
    %c384 = arith.constant 384 : index
    %c0_21 = arith.constant 0 : index
    %32 = vector.load %arg6[%c384, %c0_21] : memref<1536x128xbf16, #tpu.memory_space<vmem>>, vector<128x128xbf16>
    %cst_22 = arith.constant dense<0.000000e+00> : vector<16x128xf32>
    %33 = tpu.matmul %31, %32, %cst_22 {dimension_numbers = #tpu.dot_dimension_numbers<[1], [0], [0], [1], [0, 0, 1, 1], [], []>} : vector<16x128xbf16>, vector<128x128xbf16>, vector<16x128xf32> -> vector<16x128xf32>
    %34 = arith.addf %30, %33 : vector<16x128xf32>
    %35 = vector.extract_strided_slice %17 {offsets = [64, 0], sizes = [16, 128], strides = [1, 1]} : vector<192x128xbf16> to vector<16x128xbf16>
    %c512 = arith.constant 512 : index
    %c0_23 = arith.constant 0 : index
    %36 = vector.load %arg6[%c512, %c0_23] : memref<1536x128xbf16, #tpu.memory_space<vmem>>, vector<128x128xbf16>
    %cst_24 = arith.constant dense<0.000000e+00> : vector<16x128xf32>
    %37 = tpu.matmul %35, %36, %cst_24 {dimension_numbers = #tpu.dot_dimension_numbers<[1], [0], [0], [1], [0, 0, 1, 1], [], []>} : vector<16x128xbf16>, vector<128x128xbf16>, vector<16x128xf32> -> vector<16x128xf32>
    %38 = arith.addf %34, %37 : vector<16x128xf32>
    %39 = vector.extract_strided_slice %17 {offsets = [80, 0], sizes = [16, 128], strides = [1, 1]} : vector<192x128xbf16> to vector<16x128xbf16>
    %c640 = arith.constant 640 : index
    %c0_25 = arith.constant 0 : index
    %40 = vector.load %arg6[%c640, %c0_25] : memref<1536x128xbf16, #tpu.memory_space<vmem>>, vector<128x128xbf16>
    %cst_26 = arith.constant dense<0.000000e+00> : vector<16x128xf32>
    %41 = tpu.matmul %39, %40, %cst_26 {dimension_numbers = #tpu.dot_dimension_numbers<[1], [0], [0], [1], [0, 0, 1, 1], [], []>} : vector<16x128xbf16>, vector<128x128xbf16>, vector<16x128xf32> -> vector<16x128xf32>
    %42 = arith.addf %38, %41 : vector<16x128xf32>
    %43 = vector.extract_strided_slice %17 {offsets = [96, 0], sizes = [16, 128], strides = [1, 1]} : vector<192x128xbf16> to vector<16x128xbf16>
    %c768 = arith.constant 768 : index
    %c0_27 = arith.constant 0 : index
    %44 = vector.load %arg6[%c768, %c0_27] : memref<1536x128xbf16, #tpu.memory_space<vmem>>, vector<128x128xbf16>
    %cst_28 = arith.constant dense<0.000000e+00> : vector<16x128xf32>
    %45 = tpu.matmul %43, %44, %cst_28 {dimension_numbers = #tpu.dot_dimension_numbers<[1], [0], [0], [1], [0, 0, 1, 1], [], []>} : vector<16x128xbf16>, vector<128x128xbf16>, vector<16x128xf32> -> vector<16x128xf32>
    %46 = arith.addf %42, %45 : vector<16x128xf32>
    %47 = vector.extract_strided_slice %17 {offsets = [112, 0], sizes = [16, 128], strides = [1, 1]} : vector<192x128xbf16> to vector<16x128xbf16>
    %c896 = arith.constant 896 : index
    %c0_29 = arith.constant 0 : index
    %48 = vector.load %arg6[%c896, %c0_29] : memref<1536x128xbf16, #tpu.memory_space<vmem>>, vector<128x128xbf16>
    %cst_30 = arith.constant dense<0.000000e+00> : vector<16x128xf32>
    %49 = tpu.matmul %47, %48, %cst_30 {dimension_numbers = #tpu.dot_dimension_numbers<[1], [0], [0], [1], [0, 0, 1, 1], [], []>} : vector<16x128xbf16>, vector<128x128xbf16>, vector<16x128xf32> -> vector<16x128xf32>
    %50 = arith.addf %46, %49 : vector<16x128xf32>
    %51 = vector.extract_strided_slice %17 {offsets = [128, 0], sizes = [16, 128], strides = [1, 1]} : vector<192x128xbf16> to vector<16x128xbf16>
    %c1024 = arith.constant 1024 : index
    %c0_31 = arith.constant 0 : index
    %52 = vector.load %arg6[%c1024, %c0_31] : memref<1536x128xbf16, #tpu.memory_space<vmem>>, vector<128x128xbf16>
    %cst_32 = arith.constant dense<0.000000e+00> : vector<16x128xf32>
    %53 = tpu.matmul %51, %52, %cst_32 {dimension_numbers = #tpu.dot_dimension_numbers<[1], [0], [0], [1], [0, 0, 1, 1], [], []>} : vector<16x128xbf16>, vector<128x128xbf16>, vector<16x128xf32> -> vector<16x128xf32>
    %54 = arith.addf %50, %53 : vector<16x128xf32>
    %55 = vector.extract_strided_slice %17 {offsets = [144, 0], sizes = [16, 128], strides = [1, 1]} : vector<192x128xbf16> to vector<16x128xbf16>
    %c1152 = arith.constant 1152 : index
    %c0_33 = arith.constant 0 : index
    %56 = vector.load %arg6[%c1152, %c0_33] : memref<1536x128xbf16, #tpu.memory_space<vmem>>, vector<128x128xbf16>
    %cst_34 = arith.constant dense<0.000000e+00> : vector<16x128xf32>
    %57 = tpu.matmul %55, %56, %cst_34 {dimension_numbers = #tpu.dot_dimension_numbers<[1], [0], [0], [1], [0, 0, 1, 1], [], []>} : vector<16x128xbf16>, vector<128x128xbf16>, vector<16x128xf32> -> vector<16x128xf32>
    %58 = arith.addf %54, %57 : vector<16x128xf32>
    %59 = vector.extract_strided_slice %17 {offsets = [160, 0], sizes = [16, 128], strides = [1, 1]} : vector<192x128xbf16> to vector<16x128xbf16>
    %c1280 = arith.constant 1280 : index
    %c0_35 = arith.constant 0 : index
    %60 = vector.load %arg6[%c1280, %c0_35] : memref<1536x128xbf16, #tpu.memory_space<vmem>>, vector<128x128xbf16>
    %cst_36 = arith.constant dense<0.000000e+00> : vector<16x128xf32>
    %61 = tpu.matmul %59, %60, %cst_36 {dimension_numbers = #tpu.dot_dimension_numbers<[1], [0], [0], [1], [0, 0, 1, 1], [], []>} : vector<16x128xbf16>, vector<128x128xbf16>, vector<16x128xf32> -> vector<16x128xf32>
    %62 = arith.addf %58, %61 : vector<16x128xf32>
    %63 = vector.extract_strided_slice %17 {offsets = [176, 0], sizes = [16, 128], strides = [1, 1]} : vector<192x128xbf16> to vector<16x128xbf16>
    %c1408 = arith.constant 1408 : index
    %c0_37 = arith.constant 0 : index
    %64 = vector.load %arg6[%c1408, %c0_37] : memref<1536x128xbf16, #tpu.memory_space<vmem>>, vector<128x128xbf16>
    %cst_38 = arith.constant dense<0.000000e+00> : vector<16x128xf32>
    %65 = tpu.matmul %63, %64, %cst_38 {dimension_numbers = #tpu.dot_dimension_numbers<[1], [0], [0], [1], [0, 0, 1, 1], [], []>} : vector<16x128xbf16>, vector<128x128xbf16>, vector<16x128xf32> -> vector<16x128xf32>
    %66 = arith.addf %62, %65 : vector<16x128xf32>
    %c0_39 = arith.constant 0 : index
    %c0_40 = arith.constant 0 : index
    %67 = vector.load %arg7[%c0_39, %c0_40] : memref<1x128xf32, #tpu.memory_space<vmem>>, vector<1x128xf32>
    %68 = vector.broadcast %67 : vector<1x128xf32> to vector<16x128xf32>
    %69 = arith.addf %66, %68 : vector<16x128xf32>
    %70 = arith.truncf %69 : vector<16x128xf32> to vector<16x128xbf16>
    %c0_41 = arith.constant 0 : index
    %c0_42 = arith.constant 0 : index
    %71 = vector.load %arg8[%c0_41, %c0_42] : memref<128x128xbf16, #tpu.memory_space<vmem>>, vector<128x128xbf16>
    %cst_43 = arith.constant dense<0.000000e+00> : vector<16x128xf32>
    %72 = tpu.matmul %70, %71, %cst_43 {dimension_numbers = #tpu.dot_dimension_numbers<[1], [0], [0], [1], [0, 0, 1, 1], [], []>} : vector<16x128xbf16>, vector<128x128xbf16>, vector<16x128xf32> -> vector<16x128xf32>
    %c0_44 = arith.constant 0 : index
    %c0_45 = arith.constant 0 : index
    %73 = vector.load %arg9[%c0_44, %c0_45] : memref<1x128xf32, #tpu.memory_space<vmem>>, vector<1x128xf32>
    %74 = vector.broadcast %73 : vector<1x128xf32> to vector<16x128xf32>
    %75 = arith.addf %72, %74 : vector<16x128xf32>
    %c0_46 = arith.constant 0 : index
    %c0_47 = arith.constant 0 : index
    %76 = vector.load %arg10[%c0_46, %c0_47] : memref<16x128xf32, #tpu.memory_space<vmem>>, vector<16x128xf32>
    tpu.vector_store %arg10[%c0_46, %c0_47], %75 {strides = array<i32>} : memref<16x128xf32, #tpu.memory_space<vmem>>, vector<16x128xf32>,
    return
  }
  func.func @transform_0(%arg0: i32) -> (i32, i32, i32) {
    %c0_i32 = arith.constant 0 : i32
    %c0_i32_0 = arith.constant 0 : i32
    %c0_i32_1 = arith.constant 0 : i32
    return %c0_i32, %arg0, %c0_i32_0 : i32, i32, i32
  }
  func.func @transform_1(%arg0: i32) -> (i32, i32) {
    %c0_i32 = arith.constant 0 : i32
    %c0_i32_0 = arith.constant 0 : i32
    %c0_i32_1 = arith.constant 0 : i32
    return %c0_i32, %c0_i32_0 : i32, i32
  }
  func.func @transform_2(%arg0: i32) -> (i32, i32) {
    %c0_i32 = arith.constant 0 : i32
    %c0_i32_0 = arith.constant 0 : i32
    %c0_i32_1 = arith.constant 0 : i32
    return %c0_i32, %c0_i32_0 : i32, i32
  }
  func.func @transform_3(%arg0: i32) -> (i32, i32) {
    %c0_i32 = arith.constant 0 : i32
    %c0_i32_0 = arith.constant 0 : i32
    %c0_i32_1 = arith.constant 0 : i32
    return %c0_i32, %c0_i32_0 : i32, i32
  }
  func.func @transform_4(%arg0: i32) -> (i32, i32) {
    %c0_i32 = arith.constant 0 : i32
    %c0_i32_0 = arith.constant 0 : i32
    %c0_i32_1 = arith.constant 0 : i32
    return %c0_i32, %c0_i32_0 : i32, i32
  }
  func.func @transform_5(%arg0: i32) -> (i32, i32) {
    %c0_i32 = arith.constant 0 : i32
    %c0_i32_0 = arith.constant 0 : i32
    %c0_i32_1 = arith.constant 0 : i32
    return %c0_i32, %c0_i32_0 : i32, i32
  }
  func.func @transform_6(%arg0: i32) -> (i32, i32) {
    %c0_i32 = arith.constant 0 : i32
    %c0_i32_0 = arith.constant 0 : i32
    %c0_i32_1 = arith.constant 0 : i32
    return %c0_i32, %c0_i32_0 : i32, i32
  }
  func.func @transform_7(%arg0: i32) -> (i32, i32) {
    %c0_i32 = arith.constant 0 : i32
    %c0_i32_0 = arith.constant 0 : i32
    %c0_i32_1 = arith.constant 0 : i32
    return %c0_i32, %c0_i32_0 : i32, i32
  }
  func.func @transform_8(%arg0: i32) -> (i32, i32) {
    %c0_i32 = arith.constant 0 : i32
    %c0_i32_0 = arith.constant 0 : i32
    %c0_i32_1 = arith.constant 0 : i32
    return %c0_i32, %c0_i32_0 : i32, i32
  }
  func.func @transform_9(%arg0: i32) -> (i32, i32) {
    %c0_i32 = arith.constant 0 : i32
    %c0_i32_0 = arith.constant 0 : i32
    return %arg0, %c0_i32 : i32, i32
  }
}

</mosaic_0001>

<bundles_post_ra>
// kernel: custom-call.2
= control target key start
LH: loop header
LB: loop body
LE: loop exit
PB: predicated region body
PF: predicated region fallthrough
CT: control target
= control target key end

     0   :  { %s1672_s30 = smov 0   ;;  %s1674_s10 = smov 0   ;;  %s1981_s0 = inlined_call_operand.vmem [shape: f32[2,8,8], index: 0, kind: input, shape index: {}]   ;;  %s1982_s1 = inlined_call_operand.vmem [shape: f32[2,8,8], index: 1, kind: input, shape index: {}]   ;;  %s1983_s2 = inlined_call_operand.vmem [shape: f32[2,8,8], index: 2, kind: input, shape index: {}]   ;;  %s1984_s3 = inlined_call_operand.vmem [shape: f32[2,8,8], index: 3, kind: input, shape index: {}]   ;;  %s1985_s4 = inlined_call_operand.vmem [shape: f32[2,8], index: 4, kind: output, shape index: {0}]   ;;  %s1986_s5 = inlined_call_operand.vmem [shape: f32[2,8], index: 5, kind: output, shape index: {1}]   ;;  %s1987_s6 = inlined_call_operand.vmem [shape: f32[2,8,8], index: 6, kind: output, shape index: {2}]   ;;  %s1988_s7 = inlined_call_operand.vmem [shape: f32[2,8,8], index: 7, kind: output, shape index: {3}]   ;;  %s1989_s8 = inlined_call_operand.vmem [shape: f32[2,8,8], index: 8, kind: output, shape index: {4}]   ;;  %s1990_s9 = inlined_call_operand.vmem [shape: f32[2,8,8], index: 9, kind: output, shape index: {5}]  }
   0x1   :  { %s1676_s11 = smov 0  }
   0x2 LB: > { %s1688_s12 = sadd.s32 4294967295, %s1609_s11   ;;  %s1691_s13 = sadd.s32 1, %s1609_s11   ;;  %s1609_s11 = sphi %s1676_s11, %s1999_s11   ;;  %s1605_s10 = sphi %s1674_s10, %s1998_s10   ;;  %s1601_s30 = sphi %s1672_s30, %s1997_s30  }
   0x3   : > { %s20_s14 = sshrl.u32 %s1609_s11, 3  ;;  %s21_s15 = sshrl.u32 %s1691_s13, 3 }
   0x4   : > { %s22_s16 = ssub.s32 %s20_s14, %s21_s15  ;;  %s25_s17 = sadd.s32 1, %s1605_s10 }
   0x5   : > { %p23_p0 = scmp.eq.s32.totalorder %s22_s16, 0  ;;  %p35_p1 = scmp.ne.s32.totalorder %s1605_s10, %s1601_s30 }
   0x6   : > { %p36_p2 = scmp.eq.s32.totalorder %s1688_s12, 1  ;;  %p1470_p4 = scmp.ge.s32.totalorder %s1609_s11, 2 }
   0x7   : > { %s1700_s18 = scalar_select %p23_p0, %s1605_s10, %s25_s17  }
   0x8   : > { %p1702_p3 = por %p36_p2, %p35_p1  ;;  %86 = sbr.rel (%p1470_p4) target bundleno = 17 (0x11), region = 16 }
   0x9   : > { %1991 = sst [smem:[#allocation25_spill]] %s1700_s18  ;;  %s88_s20 = sand.u32 (!%p1470_p4), 1, %s1609_s11  }
   0xa   : > { %s1472_s21 = sshll.u32 (!%p1470_p4), %s1609_s11, 3  ;;  %s1471_s22 = sshll.u32 (!%p1470_p4), %s88_s20, 3 }
   0xb   : > { %s92_s25 = scalar_lea.vmem (!%p1470_p4), %s1981_s0, %s1472_s21  ;;  %s90_s26 = scalar_lea.vmem (!%p1470_p4), [#allocation0], %s1471_s22 }
   0xc   : > { %v120_v0 = vld [vmem:[%s92_s25] sm:$0xff] (!%p1470_p4)  ;;  %s130_s29 = scalar_lea.vmem (!%p1470_p4), %s1982_s1, %s1472_s21  ;;  %s168_s16 = scalar_lea.vmem (!%p1470_p4), %s1983_s2, %s1472_s21 }
   0xd   : > { %121 = vst [vmem:[%s90_s26] sm:$0xff] (!%p1470_p4), %v120_v0  ;;  %v158_v1 = vld [vmem:[%s130_s29] sm:$0xff] (!%p1470_p4)  ;;  %s128_s17 = scalar_lea.vmem (!%p1470_p4), [#allocation1], %s1471_s22  ;;  %s206_s23 = scalar_lea.vmem (!%p1470_p4), %s1984_s3, %s1472_s21 }
   0xe   : > { %159 = vst [vmem:[%s128_s17] sm:$0xff] (!%p1470_p4), %v158_v1  ;;  %v196_v2 = vld [vmem:[%s168_s16] sm:$0xff] (!%p1470_p4)  ;;  %s166_s24 = scalar_lea.vmem (!%p1470_p4), [#allocation2], %s1471_s22  ;;  %s204_s25 = scalar_lea.vmem (!%p1470_p4), [#allocation3], %s1471_s22 }
   0xf   : > { %197 = vst [vmem:[%s166_s24] sm:$0xff] %v196_v2  ;;  %v234_v3 = vld [vmem:[%s206_s23] sm:$0xff] }
  0x10   : > { %235 = vst [vmem:[%s204_s25] sm:$0xff] %v234_v3 }
  0x11 PF: > { %p1479_p5 = scmp.ge.s32.totalorder %s1609_s11, 1  ;;  %p240_p6 = scmp.lt.s32.totalorder %s1609_s11, 3 }
  0x13   : > { %p241_p7 = pnand %p1479_p5, %p240_p6 }
  0x15   : > { %244 = sbr.rel (%p241_p7) target bundleno = 992 (0x3e0), region = 156 }
  0x1c   : > { %s247_s26 = sand.u32 1, %s1688_s12   ;;  %s281_s27 = sand.u32 1, %s1601_s30   ;;  %v325_v4 = vlaneseq  ;;  %v1619_v11 = vmov 0.0  }
  0x1d   : > { %s1480_s28 = sshll.u32 %s247_s26, 3  ;;  %s1725_s18 = sshll.u32 %s281_s27, 1 }
  0x1e   : > { %v1727_v5 = vand.u32 127, %v325_v4  ;;  %v1729_v6 = vshrl.u32 %v325_v4, 7  ;;  %s249_s21 = scalar_lea.vmem [#allocation0], %s1480_s28  ;;  %s253_s22 = scalar_lea.vmem [#allocation1], %s1480_s28 }
  0x1f   : > { %v309_v7 = vld [vmem:[%s249_s21] sm:$0xff]  ;;  %v312_v8 = vld [vmem:[%s253_s22] sm:$0xff]  ;;  %s257_s29 = scalar_lea.vmem [#allocation2], %s1480_s28  ;;  %s261_s11 = scalar_lea.vmem [#allocation3], %s1480_s28 }
  0x20   : > { %v315_v9 = vld [vmem:[%s257_s29] sm:$0xff]  ;;  %v318_v10 = vld [vmem:[%s261_s11] sm:$0xff]  ;;  %s1731_s14 = scalar_lea.vmem [#allocation8], %s1480_s28  ;;  %s1734_s30 = scalar_lea.vmem [#allocation9], %s1480_s28  ;;  %v327_v5 = vmov %v1727_v5  ;;  %v330_v6 = vmov %v1729_v6  ;;  %vm1359_vm2 = vcmp.lt.s32.totalorder %v1727_v5, 8 }
  0x21   : > { %320 = vst [vmem:[%s1731_s14] sm:$0xff] %v1619_v11  ;;  %321 = vst [vmem:[%s1734_s30] sm:$0xff] %v1619_v11  ;;  %s308_s15 = smov [#allocation12]  ;;  %s311_s16 = smov [#allocation13]  ;;  %v340_v5 = vmov %v1727_v5  ;;  %v343_v6 = vmov %v1729_v6  ;;  %vm334_vm0 = vcmp.eq.s32.totalorder %v330_v6, %v327_v5 }
  0x22   : > { %s1737_s17 = scalar_lea.vmem [#allocation10], %s1480_s28  ;;  %s1740_s20 = scalar_lea.vmem [#allocation11], %s1480_s28  ;;  %310 = vst [vmem:[%s308_s15] sm:$0xff] %v309_v7  ;;  %313 = vst [vmem:[%s311_s16] sm:$0xff] %v312_v8  ;;  %vm347_vm1 = vcmp.eq.s32.totalorder %v343_v6, %v340_v5  ;;  %v1351_v5 = vmov %v1727_v5  ;;  %v1354_v6 = vmov %v1729_v6 }
  0x23   : > { %322 = vst [vmem:[%s1737_s17] sm:$0xff] %v1619_v11  ;;  %323 = vst [vmem:[%s1740_s20] sm:$0xff] %v1619_v11  ;;  %s314_s23 = smov [#allocation14]  ;;  %s317_s24 = smov [#allocation15]  ;;  %vm1364_vm3 = vcmp.eq.s32.totalorder %v1354_v6, %v1351_v5  ;;  %v1402_v5 = vmov %v1727_v5  ;;  %v1371_v6 = vmov %v1729_v6 }
  0x24   : > { %316 = vst [vmem:[%s314_s23] sm:$0xff] %v315_v9  ;;  %319 = vst [vmem:[%s317_s24] sm:$0xff] %v318_v10  ;;  %s324_s14 = smov %s1731_s14  ;;  %s337_s20 = smov %s1740_s20  ;;  %v1368_v5 = vmov %v1727_v5  ;;  %v1405_v6 = vmov %v1729_v6 }
  0x25   : > { %s283_s25 = scalar_lea.vmem [#allocation5], %s1725_s18  ;;  %s1355_s27 = smov [#allocation12]  ;;  %v1385_v5 = vmov %v1727_v5  ;;  %v1388_v6 = vmov %v1729_v6  ;;  %vm1415_vm4 = vcmp.eq.s32.totalorder %v1405_v6, %v1402_v5 }
  0x26   : > { %s1372_s28 = smov [#allocation13]  ;;  %s1389_s21 = smov [#allocation14] }
  0x27   : > { %s1406_s22 = smov [#allocation15] }
  0x28   : > { %v331_v12 = vld [vmem:[%s324_s14] sm:$0xff] }
  0x29   : > { %v335_v13 = vsel %vm334_vm0, 1.0, %v331_v12  ;;  %v1361_v16 = vld [vmem:[%s1355_s27] sm:$0xff] }
  0x2a   : > { %v344_v14 = vld [vmem:[%s337_s20] sm:$0xff]  ;;  %336 = vst [vmem:[%s324_s14] sm:$0xff] %v335_v13  ;;  %v1362_v18 = vsel %vm1359_vm2, %v1361_v16, 0.0 }
  0x2b   : > { %v348_v15 = vsel %vm347_vm1, 1.0, %v344_v14  ;;  %v1378_v17 = vld [vmem:[%s1372_s28] sm:$0xff]  ;;  %v1363_v22 = vmul.f32 %v1362_v18, %v1362_v18 }
  0x2c   : > { %349 = vst [vmem:[%s337_s20] sm:$0xff] %v348_v15  ;;  %v1379_v19 = vsel %vm1359_vm2, %v1378_v17, 0.0  ;;  %v1395_v20 = vld [vmem:[%s1389_s21] sm:$0xff] }
  0x2d   : > { %v1412_v21 = vld [vmem:[%s1406_s22] sm:$0xff]  ;;  %v1380_v23 = vmul.f32 %v1379_v19, %v1379_v19  ;;  %v1396_v24 = vsel %vm1359_vm2, %v1395_v20, 0.0  ;;  %v1365_v29 = vsel %vm1364_vm3, 0.0, %v1363_v22 }
  0x2e   : > { %v1413_v25 = vsel %vm1359_vm2, %v1412_v21, 0.0  ;;  %v1397_v26 = vmul.f32 %v1396_v24, %v1396_v24 }
  0x2f   : > { %v1382_v27 = vadd.f32 %v1380_v23, %v1363_v22  ;;  %v1414_v28 = vmul.f32 %v1413_v25, %v1413_v25  ;;  %v1381_v30 = vadd.f32 %v1380_v23, %v1365_v29 }
  0x31   : > { %v1399_v31 = vadd.f32 %v1397_v26, %v1382_v27  ;;  %v1398_v32 = vadd.f32 %v1397_v26, %v1381_v30  ;;  %v1416_v33 = vsel %vm1415_vm4, 0.0, %v1414_v28 }
  0x33   : > { %v1418_v34 = vadd.f32 %v1414_v28, %v1399_v31  ;;  %v1417_v35 = vadd.f32 %v1416_v33, %v1398_v32 }
  0x35   : > { %1419 = vadd.xlane.f32.xlu0 %v1418_v34 }
  0x39   : > { %1427 = vadd.xlane.f32.xlu0 %v1417_v35 }
  0xc2   : > { %v1420_v36 = vpop.xlane.xlu0 %1419 }
  0xc3   : > { %v1421_v37 = vrot.slane %v1420_v36, 4 }
  0xc5   : > { %v1422_v38 = vadd.f32 %v1421_v37, %v1420_v36 }
  0xc6   : > { %v1428_v39 = vpop.xlane.xlu0 %1427 }
  0xc7   : > { %v1423_v40 = vrot.slane %v1422_v38, 2  ;;  %v1429_v41 = vrot.slane %v1428_v39, 4 }
  0xc9   : > { %v1430_v42 = vadd.f32 %v1429_v41, %v1428_v39  ;;  %v1424_v43 = vadd.f32 %v1423_v40, %v1422_v38 }
  0xcb   : > { %v1431_v44 = vrot.slane %v1430_v42, 2  ;;  %v1425_v46 = vrot.slane %v1424_v43, 1 }
  0xcd   : > { %v1432_v45 = vadd.f32 %v1431_v44, %v1430_v42  ;;  %v1426_v49 = vadd.f32 %v1425_v46, %v1424_v43 }
  0xcf   : > { %v1433_v47 = vrot.slane %v1432_v45, 1 }
  0xd1   : > { %v1434_v48 = vadd.f32 %v1433_v47, %v1432_v45 }
  0xd3   : > { %1520 = vpush %v1434_v48 }
  0xd4   : > { %1522 = vpush %v1426_v49 }
 0x104   : > { %s1521_s29 = spop %1520 }
 0x105   : > { %s1523_s11 = spop %1522 }
 0x106   : > { %s1437_s15 = smul.f32 1e-10, %s1523_s11 }
 0x108   : > { %p1438_p8 = scmp.le.f32.partialorder %s1521_s29, %s1437_s15 }
 0x109   : > { %s1769_s16 = smov (!%p1438_p8), 0  }
 0x10a   : > { %1441 = sbr.rel (%p1438_p8) target bundleno = 948 (0x3b4), region = 499 }
 0x111 LB: >> { %s1774_s23 = smov 0   ;;  %s1613_s16 = sphi %s1769_s16, %s1993_s16  }
 0x112 LB: >>> { %s454_s24 = smov [#allocation12]  ;;  %v458_v5 = vmov %v1727_v5  ;;  %v461_v6 = vmov %v1729_v6  ;;  %s474_s27 = smov [#allocation13]  ;;  %vm777_vm14 = vcmp.eq.s32.totalorder %v1729_v6, 0  ;;  %vm789_vm15 = vcmp.eq.s32.totalorder %v1729_v6, 7  ;;  %s1617_s23 = sphi %s1774_s23, %s453_s23  }
 0x113   : >>> { %v478_v5 = vmov %v1727_v5  ;;  %v481_v6 = vmov %v1729_v6  ;;  %v462_v50 = vld [vmem:[%s454_s24] sm:$0xff]  ;;  %vm465_vm5 = vcmp.eq.s32.totalorder %v461_v6, %v458_v5  ;;  %s494_s28 = smov [#allocation15]  ;;  %s455_s21 = smov [#allocation16] }
 0x114   : >>> { %vm485_vm6 = vcmp.eq.s32.totalorder %v481_v6, %v478_v5  ;;  %v498_v5 = vmov %v1727_v5  ;;  %v501_v6 = vmov %v1729_v6  ;;  %v466_v51 = vsel %vm465_vm5, %v462_v50, 0.0  ;;  %v482_v52 = vld [vmem:[%s474_s27] sm:$0xff]  ;;  %s475_s22 = smov [#allocation17]  ;;  %s495_s29 = smov [#allocation18] }
 0x115   : >>> { %vm505_vm7 = vcmp.eq.s32.totalorder %v501_v6, %v498_v5  ;;  %v467_v53 = vrot.slane %v466_v51, 4  ;;  %v486_v54 = vsel %vm485_vm6, %v482_v52, 0.0  ;;  %v502_v55 = vld [vmem:[%s494_s28] sm:$0xff]  ;;  %s518_s11 = smov [#allocation17]  ;;  %s516_s15 = smov [#allocation16]  ;;  %v567_v5 = vmov %v1727_v5 }
 0x116   : >>> { %v487_v56 = vrot.slane %v486_v54, 4  ;;  %v506_v57 = vsel %vm505_vm7, %v502_v55, 0.0  ;;  %s520_s24 = smov [#allocation18]  ;;  %s555_s27 = smov [#allocation19]  ;;  %v570_v6 = vmov %v1729_v6  ;;  %v582_v5 = vmov %v1727_v5 }
 0x117   : >>> { %v468_v58 = vadd.f32 %v467_v53, %v466_v51  ;;  %v507_v59 = vrot.slane %v506_v57, 4  ;;  %s557_s28 = smov [#allocation20]  ;;  %v585_v6 = vmov %v1729_v6  ;;  %vm572_vm12 = vcmp.eq.s32.totalorder %v570_v6, %v567_v5  ;;  %s1796_s14 = smov %s1731_s14 }
 0x118   : >>> { %v488_v60 = vadd.f32 %v487_v56, %v486_v54  ;;  %vm587_vm13 = vcmp.eq.s32.totalorder %v585_v6, %v582_v5  ;;  %s1799_s30 = smov %s1734_s30  ;;  %s1802_s17 = smov %s1737_s17  ;;  %v825_v52 = vld [vmem:[%s1796_s14] sm:$0xff]  ;;  %v680_v5 = vmov %v1727_v5  ;;  %v683_v6 = vmov %v1729_v6 }
 0x119   : >>> { %v469_v61 = vrot.slane %v468_v58, 2  ;;  %v508_v62 = vadd.f32 %v507_v59, %v506_v57  ;;  %s1806_s20 = smov %s1740_s20  ;;  %v826_v53 = vld [vmem:[%s1799_s30] sm:$0xff]  ;;  %s819_s26 = smov [#allocation24]  ;;  %v653_v5 = vmov %v1727_v5  ;;  %v656_v6 = vmov %v1729_v6 }
 0x11a   : >>> { %v489_v63 = vrot.slane %v488_v60, 2  ;;  %v827_v56 = vld [vmem:[%s1802_s17] sm:$0xff]  ;;  %v694_v5 = vmov %v1727_v5  ;;  %v697_v6 = vmov %v1729_v6  ;;  %vm687_vm0 = vcmp.eq.s32.totalorder %v683_v6, %v680_v5  ;;  %s453_s23 = sadd.s32 1, %s1617_s23  }
 0x11b   : >>> { %v470_v0 = vadd.f32 %v469_v61, %v468_v58  ;;  %v509_v1 = vrot.slane %v508_v62, 2  ;;  %v828_v57 = vld [vmem:[%s1806_s20] sm:$0xff]  ;;  %v667_v5 = vmov %v1727_v5  ;;  %v670_v6 = vmov %v1729_v6  ;;  %p450_p9 = scmp.ge.s32.totalorder %s453_s23, 15  }
 0x11c   : >>> { %v490_v2 = vadd.f32 %v489_v63, %v488_v60  ;;  %vm661_vm1 = vcmp.eq.s32.totalorder %v656_v6, %v653_v5  ;;  %vm702_vm3 = vcmp.eq.s32.totalorder %v697_v6, %v694_v5  ;;  %vm674_vm4 = vcmp.eq.s32.totalorder %v670_v6, %v667_v5 }
 0x11d   : >>> { %v471_v3 = vrot.slane %v470_v0, 1  ;;  %v510_v4 = vadd.f32 %v509_v1, %v508_v62  ;;  %vm716_vm5 = vcmp.eq.s32.totalorder %v1727_v5, 0  ;;  %vm720_vm6 = vcmp.eq.s32.totalorder %v1727_v5, 1 }
 0x11e   : >>> { %v491_v7 = vrot.slane %v490_v2, 1  ;;  %vm733_vm7 = vcmp.eq.s32.totalorder %v1727_v5, 7  ;;  %v354_v5 = vmov (%p450_p9), %v1727_v5  ;;  %v357_v6 = vmov (%p450_p9), %v1729_v6 }
 0x11f   : >>> { %v472_v8 = vadd.f32 %v471_v3, %v470_v0  ;;  %v511_v9 = vrot.slane %v510_v4, 1  ;;  %v407_v5 = vmov (%p450_p9), %v1727_v5 }
 0x120   : >>> { %v492_v10 = vadd.f32 %v491_v7, %v490_v2 }
 0x121   : >>> { %473 = vst [vmem:[%s455_s21] sm:$0x1] %v472_v8  ;;  %v512_v11 = vadd.f32 %v511_v9, %v510_v4  ;;  %s514_s21 = smov [#allocation21] }
 0x122   : >>> { %493 = vst [vmem:[%s475_s22] sm:$0x1] %v492_v10  ;;  %s515_s22 = smov [#allocation22]  ;;  %s559_s21 = smov %s514_s21 }
 0x123   : >>> { %513 = vst [vmem:[%s495_s29] sm:$0x1] %v512_v11  ;;  %s561_s22 = smov %s515_s22  ;;  %s563_s29 = smov [#allocation21] }
 0x128   : >>> { %v517_v14 = vld [vmem:[%s516_s15] sm:$0xff]  ;;  %s576_s15 = smov [#allocation23] }
 0x129   : >>> { %v519_v12 = vld [vmem:[%s518_s11] sm:$0xff]  ;;  %v540_v27 = vand.u32 2147483647, %v517_v14  ;;  %s578_s11 = smov [#allocation22] }
 0x12a   : >>> { %v523_v13 = vmul.f32 2.0, %v519_v12  ;;  %v521_v15 = vld [vmem:[%s520_s24] sm:$0xff]  ;;  %v541_v32 = vand.u32 2147483647, %v519_v12  ;;  %s593_s24 = smov [#allocation23] }
 0x12b   : >>> { %v522_v16 = vsub.f32 %v521_v15, %v517_v14  ;;  %v542_v28 = vand.u32 2147483647, %v521_v15 }
 0x12c   : >>> { %1571 = vrcp.f32 %v523_v13 }
 0x12d   : >>> { %v543_v31 = vmin.f32 %v540_v27, %v542_v28 }
 0x12f   : >>> { %v544_v33 = vmul.f32 1.1920929e-08, %v543_v31 }
 0x131   : >>> { %vm545_vm11 = vcmp.le.f32.partialorder %v541_v32, %v544_v33 }
 0x136   : >>> { %v1572_v17 = vpop.eup %1571 }
 0x137   : >>> { %v525_v18 = vmul.f32 %v1572_v17, %v522_v16 }
 0x139   : >>> { %v527_v19 = vmul.f32 %v525_v18, %v525_v18  ;;  %vm526_vm10 = vcmp.ge.f32.partialorder %v525_v18, 0.0 }
 0x13b   : >>> { %v528_v20 = vadd.f32 1.0, %v527_v19 }
 0x13d   : >>> { %1573 = vrsqrt.f32 %v528_v20  ;;  %vm531_vm8 = vcmp.eq.f32.partialorder %v528_v20, inf  ;;  %v534_v22 = vand.u32 2147483648, %v528_v20  ;;  %vm533_vm9 = vcmp.eq.f32.partialorder %v528_v20, 0.0 }
 0x147   : >>> { %v1574_v21 = vpop.eup %1573 }
 0x148   : >>> { %v530_v23 = vmul.f32 %v1574_v21, %v528_v20 }
 0x14a   : >>> { %v532_v24 = vsel %vm531_vm8, %v528_v20, %v530_v23  ;;  %vm369_vm8 = vcmp.eq.s32.totalorder (%p450_p9), %v357_v6, %v354_v5  ;;  %v410_v6 = vmov (%p450_p9), %v1729_v6  ;;  %v373_v5 = vmov (%p450_p9), %v1727_v5 }
 0x14b   : >>> { %v535_v25 = vsel %vm533_vm9, %v534_v22, %v532_v24  ;;  %v376_v6 = vmov (%p450_p9), %v1729_v6  ;;  %v390_v5 = vmov (%p450_p9), %v1727_v5  ;;  %vm422_vm9 = vcmp.eq.s32.totalorder (%p450_p9), %v410_v6, %v407_v5 }
 0x14c   : >>> { %v536_v26 = vxor.u32 2147483648, %v535_v25  ;;  %v393_v6 = vmov (%p450_p9), %v1729_v6 }
 0x14e   : >>> { %v537_v29 = vsel %vm526_vm10, %v535_v25, %v536_v26 }
 0x14f   : >>> { %v538_v30 = vadd.f32 %v537_v29, %v525_v18 }
 0x151   : >>> { %1575 = vrcp.f32 %v538_v30 }
 0x15b   : >>> { %v1576_v34 = vpop.eup %1575 }
 0x15c   : >>> { %v546_v35 = vsel %vm545_vm11, 0.0, %v1576_v34 }
 0x15d   : >>> { %v547_v36 = vmul.f32 %v546_v35, %v546_v35  ;;  %v551_v37 = vmul.f32 %v546_v35, %v519_v12 }
 0x15f   : >>> { %v548_v38 = vadd.f32 1.0, %v547_v36  ;;  %v552_v39 = vsub.f32 %v517_v14, %v551_v37  ;;  %v554_v40 = vadd.f32 %v551_v37, %v521_v15 }
 0x161   : >>> { %1577 = vrsqrt.f32 %v548_v38  ;;  %556 = vst [vmem:[%s555_s27] sm:$0xff] %v552_v39  ;;  %558 = vst [vmem:[%s557_s28] sm:$0xff] %v554_v40  ;;  %s1789_s27 = smov [#allocation12]  ;;  %s591_s28 = smov [#allocation24] }
 0x162   : >>> { %v601_v49 = vld [vmem:[%s1789_s27] sm:$0xff] }
 0x16b   : >>> { %v1578_v41 = vpop.eup %1577 }
 0x16c   : >>> { %560 = vst [vmem:[%s559_s21] sm:$0xff] %v1578_v41  ;;  %v550_v42 = vmul.f32 %v1578_v41, %v546_v35  ;;  %s1791_s21 = smov [#allocation13] }
 0x16d   : >>> { %v602_v50 = vld [vmem:[%s1791_s21] sm:$0xff] }
 0x16e   : >>> { %562 = vst [vmem:[%s561_s22] sm:$0xff] %v550_v42  ;;  %s1793_s22 = smov [#allocation15] }
 0x16f   : >>> { %v604_v51 = vld [vmem:[%s1793_s22] sm:$0xff] }
 0x173   : >>> { %v564_v43 = vld [vmem:[%s563_s29] ss:$0 sm:$0xff]  ;;  %s817_s29 = smov [#allocation23] }
 0x174   : >>> { %v573_v44 = vsel %vm572_vm12, %v564_v43, 0.0 }
 0x175   : >>> { %574 = vadd.xlane.f32.xlu0 %v573_v44  ;;  %v579_v45 = vld [vmem:[%s578_s11] ss:$0 sm:$0xff]  ;;  %s1808_s11 = smov [#allocation14] }
 0x176   : >>> { %v588_v46 = vsel %vm587_vm13, %v579_v45, 0.0  ;;  %v603_v58 = vld [vmem:[%s1808_s11] sm:$0xff] }
 0x179   : >>> { %589 = vadd.xlane.f32.xlu0 %v588_v46 }
 0x202   : >>> { %v575_v47 = vpop.xlane.xlu0 %574 }
 0x203   : >>> { %577 = vst [vmem:[%s576_s15] sm:$0xff] %v575_v47  ;;  %s595_s15 = smov [#allocation24] }
 0x206   : >>> { %v590_v48 = vpop.xlane.xlu0 %589 }
 0x207   : >>> { %592 = vst [vmem:[%s591_s28] sm:$0xff] %v590_v48  ;;  %s1835_s28 = smov [#allocation14] }
 0x20a   : >>> { %v594_v54 = vld [vmem:[%s593_s24] sm:$0xff]  ;;  %s623_s24 = smov [#allocation22] }
 0x20b   : >>> { %v818_v55 = vld [vmem:[%s817_s29] sm:$0xff]  ;;  %v605_v59 = vmul.f32 %v601_v49, %v594_v54  ;;  %v608_v60 = vmul.f32 %v602_v50, %v594_v54  ;;  %v615_v61 = vmul.f32 %v604_v51, %v594_v54  ;;  %v612_v4 = vmul.f32 %v603_v58, %v594_v54  ;;  %s650_s29 = smov [#allocation19] }
 0x20c   : >>> { %v829_v62 = vmul.f32 %v825_v52, %v818_v55  ;;  %v832_v63 = vmul.f32 %v826_v53, %v818_v55  ;;  %v836_v0 = vmul.f32 %v827_v56, %v818_v55  ;;  %v839_v1 = vmul.f32 %v828_v57, %v818_v55  ;;  %v624_v24 = vld [vmem:[%s623_s24] ss:$0 sm:$0xff]  ;;  %s690_s24 = smov [#allocation15] }
 0x20d   : >>> { %v657_v55 = vld [vmem:[%s650_s29] ss:$0 sm:$0xff]  ;;  %s706_s29 = smov [#allocation13] }
 0x20e   : >>> { %v596_v2 = vld [vmem:[%s595_s15] sm:$0xff]  ;;  %s677_s15 = smov [#allocation14] }
 0x20f   : >>> { %v820_v3 = vld [vmem:[%s819_s26] sm:$0xff]  ;;  %v609_v7 = vmul.f32 %v604_v51, %v596_v2  ;;  %v611_v8 = vmul.f32 %v601_v49, %v596_v2  ;;  %v614_v9 = vmul.f32 %v602_v50, %v596_v2  ;;  %v606_v14 = vmul.f32 %v603_v58, %v596_v2  ;;  %s621_s26 = smov [#allocation21] }
 0x210   : >>> { %v830_v10 = vmul.f32 %v827_v56, %v820_v3  ;;  %v833_v11 = vmul.f32 %v828_v57, %v820_v3  ;;  %v835_v12 = vmul.f32 %v825_v52, %v820_v3  ;;  %v838_v13 = vmul.f32 %v826_v53, %v820_v3  ;;  %v622_v23 = vld [vmem:[%s621_s26] ss:$0 sm:$0xff]  ;;  %s649_s26 = smov [#allocation12] }
 0x211   : >>> { %v610_v15 = vsub.f32 %v608_v60, %v609_v7  ;;  %v616_v16 = vadd.f32 %v615_v61, %v614_v9  ;;  %v613_v18 = vadd.f32 %v612_v4, %v611_v8  ;;  %v607_v22 = vsub.f32 %v605_v59, %v606_v14 }
 0x212   : >>> { %v831_v17 = vsub.f32 %v829_v62, %v830_v10  ;;  %v834_v19 = vsub.f32 %v832_v63, %v833_v11  ;;  %v837_v20 = vadd.f32 %v836_v0, %v835_v12  ;;  %v840_v21 = vadd.f32 %v839_v1, %v838_v13 }
 0x213   : >>> { %618 = vst [vmem:[%s1791_s21] sm:$0xff] %v610_v15  ;;  %620 = vst [vmem:[%s1793_s22] sm:$0xff] %v616_v16  ;;  %s1837_s21 = smov [#allocation15]  ;;  %s1841_s22 = smov [#allocation13] }
 0x214   : >>> { %841 = vst [vmem:[%s1796_s14] sm:$0xff] %v831_v17  ;;  %619 = vst [vmem:[%s1808_s11] sm:$0xff] %v613_v18  ;;  %s845_s14 = smov %s1731_s14  ;;  %s691_s11 = smov [#allocation20] }
 0x215   : >>> { %842 = vst [vmem:[%s1799_s30] sm:$0xff] %v834_v19  ;;  %843 = vst [vmem:[%s1802_s17] sm:$0xff] %v837_v20  ;;  %s846_s17 = smov %s1737_s17  ;;  %s1828_s30 = smov %s1734_s30  ;;  %v698_v56 = vld [vmem:[%s691_s11] ss:$0 sm:$0xff] }
 0x216   : >>> { %844 = vst [vmem:[%s1806_s20] sm:$0xff] %v840_v21  ;;  %617 = vst [vmem:[%s1789_s27] sm:$0xff] %v607_v22  ;;  %s1831_s20 = smov %s1740_s20  ;;  %s1839_s27 = smov [#allocation12] }
 0x217   : >>> { %s1621_s11 = smov 127  }
 0x21a   : >>> { %v632_v39 = vld [vmem:[%s1837_s21] sm:$0xff] }
 0x21b   : >>> { %v847_v25 = vld [vmem:[%s845_s14] ss:$0 sm:$0xff]  ;;  %v1499_v27 = vld [vmem:[%s845_s14 + $0x7] ss:$0 sm:$0xff]  ;;  %v640_v42 = vmul.f32 %v632_v39, %v624_v24  ;;  %v643_v46 = vmul.f32 %v632_v39, %v622_v23 }
 0x21c   : >>> { %v1498_v26 = vld [vmem:[%s845_s14 - $0x1] sm:$0xfe]  ;;  %v1503_v34 = vld [vmem:[%s1828_s30 + $0x7] ss:$0 sm:$0xff] }
 0x21d   : >>> { %v854_v28 = vsel %vm777_vm14, %v847_v25, %v1498_v26  ;;  %v858_v29 = vld [vmem:[%s846_s17] ss:$0 sm:$0xff]  ;;  %v1501_v30 = vld [vmem:[%s846_s17 + $0x1] sm:$0x7f] }
 0x21e   : >>> { %v871_v31 = vld [vmem:[%s1828_s30] ss:$0 sm:$0xff]  ;;  %857 = vst [vmem:[%s845_s14] sm:$0xff] %v854_v28  ;;  %v866_v32 = vsel %vm789_vm15, %v1499_v27, %v1501_v30  ;;  %v1505_v37 = vld [vmem:[%s1831_s20 + $0x1] sm:$0x7f] }
 0x21f   : >>> { %v1502_v33 = vld [vmem:[%s1828_s30 - $0x1] sm:$0xfe]  ;;  %1500 = vst [vmem:[%s845_s14 + $0x1] sm:$0x1] %v858_v29  ;;  %868 = vst [vmem:[%s846_s17] sm:$0xff] %v866_v32  ;;  %v890_v40 = vsel %vm789_vm15, %v1503_v34, %v1505_v37 }
 0x220   : >>> { %v882_v35 = vld [vmem:[%s1831_s20] ss:$0 sm:$0xff]  ;;  %v878_v36 = vsel %vm777_vm14, %v871_v31, %v1502_v33 }
 0x221   : >>> { %v631_v38 = vld [vmem:[%s1835_s28] sm:$0xff]  ;;  %881 = vst [vmem:[%s1828_s30] sm:$0xff] %v878_v36  ;;  %892 = vst [vmem:[%s1831_s20] sm:$0xff] %v890_v40 }
 0x222   : >>> { %v639_v41 = vmul.f32 %v631_v38, %v622_v23  ;;  %v642_v43 = vmul.f32 %v631_v38, %v624_v24  ;;  %v629_v44 = vld [vmem:[%s1839_s27] sm:$0xff]  ;;  %1504 = vst [vmem:[%s1828_s30 + $0x1] sm:$0x1] %v882_v35 }
 0x223   : >>> { %v630_v45 = vld [vmem:[%s1841_s22] sm:$0xff]  ;;  %v633_v47 = vmul.f32 %v629_v44, %v622_v23  ;;  %v636_v49 = vmul.f32 %v629_v44, %v624_v24 }
 0x224   : >>> { %v634_v48 = vmul.f32 %v630_v45, %v624_v24  ;;  %v641_v50 = vsub.f32 %v639_v41, %v640_v42  ;;  %v637_v51 = vmul.f32 %v630_v45, %v622_v23  ;;  %v644_v52 = vadd.f32 %v643_v46, %v642_v43 }
 0x226   : >>> { %v635_v53 = vsub.f32 %v633_v47, %v634_v48  ;;  %647 = vst [vmem:[%s1835_s28] sm:$0xff] %v641_v50  ;;  %v638_v54 = vadd.f32 %v637_v51, %v636_v49  ;;  %648 = vst [vmem:[%s1837_s21] sm:$0xff] %v644_v52  ;;  %s664_s28 = smov [#allocation13]  ;;  %s1875_s21 = smov [#allocation14] }
 0x228   : >>> { %645 = vst [vmem:[%s1839_s27] sm:$0xff] %v635_v53  ;;  %646 = vst [vmem:[%s1841_s22] sm:$0xff] %v638_v54  ;;  %s705_s27 = smov [#allocation12]  ;;  %s1620_s22 = smov 1  }
 0x22d   : >>> { %v684_v57 = vld [vmem:[%s677_s15] sm:$0xff] }
 0x22e   : >>> { %v688_v58 = vsel %vm687_vm0, 0.0, %v684_v57  ;;  %v699_v60 = vld [vmem:[%s690_s24] sm:$0xff] }
 0x22f   : >>> { %v658_v59 = vld [vmem:[%s649_s26] sm:$0xff]  ;;  %689 = vst [vmem:[%s677_s15] sm:$0xff] %v688_v58  ;;  %v703_v63 = vsel %vm702_vm3, %v698_v56, %v699_v60  ;;  %s1878_s15 = smov [#allocation15] }
 0x230   : >>> { %v662_v61 = vsel %vm661_vm1, %v657_v55, %v658_v59  ;;  %v671_v62 = vld [vmem:[%s664_s28] sm:$0xff]  ;;  %704 = vst [vmem:[%s690_s24] sm:$0xff] %v703_v63  ;;  %s793_s24 = smov [#allocation13] }
 0x231   : >>> { %663 = vst [vmem:[%s649_s26] sm:$0xff] %v662_v61  ;;  %v675_v0 = vsel %vm674_vm4, 0.0, %v671_v62  ;;  %s769_s26 = smov [#allocation12] }
 0x232   : >>> { %676 = vst [vmem:[%s664_s28] sm:$0xff] %v675_v0  ;;  %s770_s28 = smov [#allocation14] }
 0x236   : >>> { %v743_v1 = vld [vmem:[%s1875_s21] sm:$0xff] }
 0x237   : >>> { %744 = vrot.lane.b32.xlu0 %v743_v1, %s1620_s22  ;;  %v739_v4 = vld [vmem:[%s1878_s15] sm:$0xff] }
 0x238   : >>> { %v711_v2 = vld [vmem:[%s705_s27] sm:$0xff] }
 0x239   : >>> { %712 = vrot.lane.b32.xlu1 %v711_v2, %s1620_s22  ;;  %v707_v3 = vld [vmem:[%s706_s29] sm:$0xff] }
 0x23d   : >>> { %708 = vrot.lane.b32.xlu1 %v707_v3, %s1620_s22 }
 0x241   : >>> { %729 = vrot.lane.b32.xlu1 %v707_v3, %s1621_s11 }
 0x245   : >>> { %740 = vrot.lane.b32.xlu1 %v739_v4, %s1620_s22  ;;  %s358_s22 = smov (%p450_p9), [#allocation12] }
 0x249   : >>> { %761 = vrot.lane.b32.xlu1 %v739_v4, %s1621_s11  ;;  %s394_s11 = smov (%p450_p9), [#allocation14] }
 0x2a9   : >>> { %v745_v13 = vpop.permute.xlu0 %744 }
 0x2aa   : >>> { %v749_v15 = vsel %vm716_vm5, %v743_v1, %v745_v13 }
 0x2ab   : >>> { %v713_v7 = vpop.permute.xlu1 %712 }
 0x2ac   : >>> { %v717_v8 = vsel %vm716_vm5, %v711_v2, %v713_v7 }
 0x2af   : >>> { %v709_v9 = vpop.permute.xlu1 %708 }
 0x2b0   : >>> { %v721_v10 = vsel %vm720_vm6, %v709_v9, %v717_v8 }
 0x2b1   : >>> { %v727_v11 = vsel %vm1359_vm2, %v721_v10, 0.0 }
 0x2b2   : >>> { %735 = vst [vmem:[%s705_s27] sm:$0xff] %v727_v11  ;;  %s794_s27 = smov [#allocation15] }
 0x2b3   : >>> { %v730_v12 = vpop.permute.xlu1 %729 }
 0x2b4   : >>> { %v734_v14 = vsel %vm733_vm7, %v711_v2, %v730_v12 }
 0x2b5   : >>> { %736 = vst [vmem:[%s706_s29] sm:$0xff] %v734_v14  ;;  %s377_s29 = smov (%p450_p9), [#allocation13] }
 0x2b7   : >>> { %v741_v16 = vpop.permute.xlu1 %740 }
 0x2b8   : >>> { %v753_v17 = vsel %vm720_vm6, %v741_v16, %v749_v15 }
 0x2b9   : >>> { %v771_v18 = vld [vmem:[%s769_s26] ss:$0 sm:$0xff]  ;;  %v1491_v20 = vld [vmem:[%s769_s26 + $0x7] ss:$0 sm:$0xff]  ;;  %v759_v22 = vsel %vm1359_vm2, %v753_v17, 0.0 }
 0x2ba   : >>> { %v1490_v19 = vld [vmem:[%s769_s26 - $0x1] sm:$0xfe]  ;;  %767 = vst [vmem:[%s1875_s21] sm:$0xff] %v759_v22  ;;  %s893_s21 = sadd.s32 (%p450_p9), 1, %s1613_s16  }
 0x2bb   : >>> { %v778_v21 = vsel %vm777_vm14, %v771_v18, %v1490_v19  ;;  %v762_v23 = vpop.permute.xlu1 %761  ;;  %p446_p10 = scmp.ge.s32.totalorder (%p450_p9), %s893_s21, 15  ;;  %s1993_s16 = smov (%p450_p9), %s893_s21 }
 0x2bc   : >>> { %781 = vst [vmem:[%s769_s26] sm:$0xff] %v778_v21  ;;  %v795_v24 = vld [vmem:[%s793_s24] ss:$0 sm:$0xff]  ;;  %v1495_v26 = vld [vmem:[%s793_s24 + $0x7] ss:$0 sm:$0xff]  ;;  %v766_v27 = vsel %vm733_vm7, %v743_v1, %v762_v23 }
 0x2bd   : >>> { %v1494_v25 = vld [vmem:[%s793_s24 - $0x1] sm:$0xfe]  ;;  %768 = vst [vmem:[%s1878_s15] sm:$0xff] %v766_v27  ;;  %s411_s15 = smov (%p450_p9), [#allocation15] }
 0x2be   : >>> { %v802_v28 = vsel %vm777_vm14, %v795_v24, %v1494_v25 }
 0x2bf   : >>> { %805 = vst [vmem:[%s793_s24] sm:$0xff] %v802_v28 }
 0x2c1   : >>> { %v782_v29 = vld [vmem:[%s770_s28] ss:$0 sm:$0xff]  ;;  %v1493_v30 = vld [vmem:[%s770_s28 + $0x1] sm:$0x7f] }
 0x2c2   : >>> { %1492 = vst [vmem:[%s769_s26 + $0x1] sm:$0x1] %v782_v29  ;;  %v790_v31 = vsel %vm789_vm15, %v1491_v20, %v1493_v30  ;;  %452 = sbr.rel (!%p450_p9) target bundleno = 274 (0x112), region = 494 }
 0x2c3   : >>> { %792 = vst [vmem:[%s770_s28] sm:$0xff] %v790_v31 }
 0x2c4   : >>> { %v806_v32 = vld [vmem:[%s794_s27] ss:$0 sm:$0xff]  ;;  %v1497_v33 = vld [vmem:[%s794_s27 + $0x1] sm:$0x7f] }
 0x2c5   : >>> { %1496 = vst [vmem:[%s793_s24 + $0x1] sm:$0x1] %v806_v32  ;;  %v814_v34 = vsel %vm789_vm15, %v1495_v26, %v1497_v33 }
 0x2c6   : >>> { %816 = vst [vmem:[%s794_s27] sm:$0xff] %v814_v34 }
 0x2c9   : >> { %v364_v35 = vld [vmem:[%s358_s22] sm:$0xff] }
 0x2ca   : >> { %v365_v37 = vsel %vm1359_vm2, %v364_v35, 0.0  ;;  %v400_v39 = vld [vmem:[%s394_s11] sm:$0xff] }
 0x2cb   : >> { %v366_v41 = vmul.f32 %v365_v37, %v365_v37  ;;  %v401_v43 = vsel %vm1359_vm2, %v400_v39, 0.0 }
 0x2cc   : >> { %v383_v36 = vld [vmem:[%s377_s29] sm:$0xff]  ;;  %v402_v45 = vmul.f32 %v401_v43, %v401_v43 }
 0x2cd   : >> { %v384_v38 = vsel %vm1359_vm2, %v383_v36, 0.0  ;;  %v417_v40 = vld [vmem:[%s411_s15] sm:$0xff]  ;;  %v370_v48 = vsel %vm369_vm8, 0.0, %v366_v41 }
 0x2ce   : >> { %v385_v42 = vmul.f32 %v384_v38, %v384_v38  ;;  %v418_v44 = vsel %vm1359_vm2, %v417_v40, 0.0 }
 0x2cf   : >> { %v419_v47 = vmul.f32 %v418_v44, %v418_v44 }
 0x2d0   : >> { %v387_v46 = vadd.f32 %v385_v42, %v366_v41  ;;  %v386_v49 = vadd.f32 %v385_v42, %v370_v48 }
 0x2d1   : >> { %v423_v52 = vsel %vm422_vm9, 0.0, %v419_v47 }
 0x2d2   : >> { %v404_v50 = vadd.f32 %v402_v45, %v387_v46  ;;  %v403_v51 = vadd.f32 %v402_v45, %v386_v49 }
 0x2d4   : >> { %v425_v53 = vadd.f32 %v419_v47, %v404_v50  ;;  %v424_v54 = vadd.f32 %v423_v52, %v403_v51 }
 0x2d6   : >> { %426 = vadd.xlane.f32.xlu0 %v425_v53 }
 0x2da   : >> { %434 = vadd.xlane.f32.xlu0 %v424_v54 }
 0x363   : >> { %v427_v55 = vpop.xlane.xlu0 %426 }
 0x364   : >> { %v428_v56 = vrot.slane %v427_v55, 4 }
 0x366   : >> { %v429_v57 = vadd.f32 %v428_v56, %v427_v55 }
 0x367   : >> { %v435_v58 = vpop.xlane.xlu0 %434 }
 0x368   : >> { %v430_v59 = vrot.slane %v429_v57, 2  ;;  %v436_v60 = vrot.slane %v435_v58, 4 }
 0x36a   : >> { %v437_v61 = vadd.f32 %v436_v60, %v435_v58  ;;  %v431_v62 = vadd.f32 %v430_v59, %v429_v57 }
 0x36c   : >> { %v438_v63 = vrot.slane %v437_v61, 2  ;;  %v432_v1 = vrot.slane %v431_v62, 1 }
 0x36e   : >> { %v439_v0 = vadd.f32 %v438_v63, %v437_v61  ;;  %v433_v4 = vadd.f32 %v432_v1, %v431_v62 }
 0x370   : >> { %v440_v2 = vrot.slane %v439_v0, 1 }
 0x372   : >> { %v441_v3 = vadd.f32 %v440_v2, %v439_v0 }
 0x374   : >> { %1524 = vpush %v441_v3 }
 0x375   : >> { %1526 = vpush %v433_v4 }
 0x3a5   : >> { %s1525_s23 = spop %1524 }
 0x3a6   : >> { %s1527_s26 = spop %1526 }
 0x3a7   : >> { %s444_s24 = smul.f32 1e-10, %s1527_s26 }
 0x3a9   : >> { %p445_p11 = scmp.le.f32.partialorder %s1525_s23, %s444_s24 }
 0x3ab   : >> { %p447_p12 = por %p446_p10, %p445_p11 }
 0x3ad   : > { %895 = sbr.rel (!%p447_p12) target bundleno = 273 (0x111), region = 505 }
 0x3b4 PF: > { %s900_s28 = smov [#allocation12]  ;;  %v904_v5 = vmov %v1727_v5  ;;  %v907_v6 = vmov %v1729_v6  ;;  %s920_s27 = smov [#allocation15] }
 0x3b5   : > { %v924_v5 = vmov %v1727_v5  ;;  %v927_v6 = vmov %v1729_v6  ;;  %v908_v7 = vld [vmem:[%s900_s28] sm:$0xff]  ;;  %vm911_vm10 = vcmp.eq.s32.totalorder %v907_v6, %v904_v5  ;;  %s896_s16 = sand.u32 7, %s1688_s12   ;;  %s1994_s29 = scalar_lea.vmem [#allocation7], %s1725_s18 }
 0x3b6   : > { %vm931_vm11 = vcmp.eq.s32.totalorder %v927_v6, %v924_v5  ;;  %v912_v8 = vsel %vm911_vm10, %v908_v7, 0.0  ;;  %v928_v10 = vld [vmem:[%s920_s27] sm:$0xff]  ;;  %s897_s21 = scalar_lea.vmem [#allocation4], %s896_s16  ;;  %s899_s22 = scalar_lea.vmem [#allocation6], %s896_s16 }
 0x3b7   : > { %v913_v9 = vrot.slane %v912_v8, 4  ;;  %v932_v11 = vsel %vm931_vm11, %v928_v10, 0.0  ;;  %s901_s21 = smov %s897_s21  ;;  %s921_s22 = smov %s899_s22 }
 0x3b8   : > { %v933_v13 = vrot.slane %v932_v11, 4  ;;  %s979_s11 = sshrl.u32 (%p1702_p3), %s1688_s12, 3 }
 0x3b9   : > { %v914_v12 = vadd.f32 %v913_v9, %v912_v8  ;;  %s1512_s15 = sshll.u32 (%p1702_p3), %s979_s11, 1 }
 0x3ba   : > { %v934_v15 = vadd.f32 %v933_v13, %v932_v11  ;;  %s981_s24 = scalar_lea.vmem (%p1702_p3), %s1985_s4, %s1512_s15 }
 0x3bb   : > { %v915_v14 = vrot.slane %v914_v12, 2 }
 0x3bc   : > { %v935_v17 = vrot.slane %v934_v15, 2 }
 0x3bd   : > { %v916_v16 = vadd.f32 %v915_v14, %v914_v12 }
 0x3be   : > { %v936_v19 = vadd.f32 %v935_v17, %v934_v15 }
 0x3bf   : > { %v917_v18 = vrot.slane %v916_v16, 1 }
 0x3c0   : > { %v937_v5 = vrot.slane %v936_v19, 1 }
 0x3c1   : > { %v918_v20 = vadd.f32 %v917_v18, %v916_v16 }
 0x3c2   : > { %v938_v6 = vadd.f32 %v937_v5, %v936_v19 }
 0x3c3   : > { %919 = vst [vmem:[%s901_s21] sm:$0x1] %v918_v20 }
 0x3c4   : > { %939 = vst [vmem:[%s921_s22] sm:$0x1] %v938_v6 }
 0x3c6   : > { %978 = sbr.rel (!%p1702_p3) target bundleno = 980 (0x3d4), region = 174 }
 0x3ca   : > { %v943_v21 = vld [vmem:[#allocation4] sm:$0x3] }
 0x3cb   : > { %945 = vst [vmem:[%s283_s25] sm:$0x3] %v943_v21  ;;  %v949_v22 = vld [vmem:[#allocation6] sm:$0x3] }
 0x3cc   : > { %951 = vst [vmem:[%s1994_s29] sm:$0x3] %v949_v22 }
 0x3d2   : > { %v997_v23 = vld [vmem:[%s283_s25] sm:$0x3] }
 0x3d3   : > { %998 = vst [vmem:[%s981_s24] sm:$0x3] %v997_v23 }
 0x3d4 PF: > { %1015 = sbr.rel (!%p1702_p3) target bundleno = 988 (0x3dc), region = 208  ;;  %s1016_s28 = sshrl.u32 (%p1702_p3), %s1688_s12, 3 }
 0x3d5   : > { %s1995_s27 = scalar_lea.vmem (%p1702_p3), [#allocation7], %s1725_s18  ;;  %s1513_s16 = sshll.u32 (%p1702_p3), %s1016_s28, 1 }
 0x3d6   : > { %s1018_s25 = scalar_lea.vmem (%p1702_p3), %s1986_s5, %s1513_s16 }
 0x3da   : > { %v1034_v24 = vld [vmem:[%s1995_s27] sm:$0x3] (%p1702_p3) }
 0x3db   : > { %1035 = vst [vmem:[%s1018_s25] sm:$0x3] %v1034_v24 }
 0x3dc PF: > { %s1514_s29 = sshll.u32 %s1688_s12, 3  ;;  %v1079_v25 = vld [vmem:[%s1731_s14] sm:$0xff]  ;;  %v1113_v26 = vld [vmem:[%s1734_s30] sm:$0xff] }
 0x3dd   : > { %v1147_v27 = vld [vmem:[%s1737_s17] sm:$0xff]  ;;  %s1051_s18 = scalar_lea.vmem %s1987_s6, %s1514_s29  ;;  %s1085_s26 = scalar_lea.vmem %s1988_s7, %s1514_s29  ;;  %v1181_v28 = vld [vmem:[%s1740_s20] sm:$0xff] }
 0x3de   : > { %1080 = vst [vmem:[%s1051_s18] sm:$0xff] %v1079_v25  ;;  %1114 = vst [vmem:[%s1085_s26] sm:$0xff] %v1113_v26  ;;  %s1119_s27 = scalar_lea.vmem %s1989_s8, %s1514_s29  ;;  %s1153_s14 = scalar_lea.vmem %s1990_s9, %s1514_s29 }
 0x3df   : > { %1148 = vst [vmem:[%s1119_s27] sm:$0xff] %v1147_v27  ;;  %1182 = vst [vmem:[%s1153_s14] sm:$0xff] %v1181_v28 }
 0x3e0 PF: > { %s1996_s17 = sld [smem:[#allocation25_spill]]  ;;  %p13_p13 = scmp.ge.s32.totalorder %s1691_s13, 4  }
 0x3e1   : > { %s1997_s30 = smov %s1605_s10  ;;  %s1999_s11 = smov %s1691_s13 }
 0x3e2   :  { %15 = sbr.rel (!%p13_p13) target bundleno = 2 (0x2), region = 516 }
 0x3e6   : > { %s1998_s10 = smov %s1996_s17 }

// kernel: reverse
= control target key start
LH: loop header
LB: loop body
LE: loop exit
PB: predicated region body
PF: predicated region fallthrough
CT: control target
= control target key end

     0   :  { %v158_v5 = vlaneseq  ;;  %s355_s0 = inlined_call_operand.vmem [shape: bf16[2,16,12], index: 0, kind: input, shape index: {}]   ;;  %s356_s1 = inlined_call_operand.vmem [shape: bf16[2,16,12], index: 1, kind: output, shape index: {}]  }
   0x1   :  { %v18_v0 = vld [vmem:[%s355_s0] sm:$0xff]   ;;  %v22_v1 = vld [vmem:[%s355_s0 + $0x8] sm:$0xff]  }
   0x2   :  { %19 = vst [vmem:[#allocation1 + $0x4] sm:$0xff] %v18_v0   ;;  %23 = vst [vmem:[#allocation1 + $0x10] sm:$0xff] %v22_v1   ;;  %v159_v12 = vshrl.u32 %v158_v5, 7 }
   0x4   :  { %vm160_vm0 = vcmp.lt.s32.totalorder %v159_v12, 4 }
   0x9   :  { %v308_v2 = vld [vmem:[#allocation1 + $0x10] sm:$0xff]   ;;  %v312_v3 = vld [vmem:[#allocation1 + $0x8] sm:$0xff]   ;;  %v316_v4 = vld [vmem:[#allocation1] sm:$0xff]  }
   0xa   :  { %v309_v6 = vunpack.c.l.bf16 %v308_v2  ;;  %v310_v7 = vunpack.c.h.bf16 %v308_v2  ;;  %v313_v8 = vunpack.c.l.bf16 %v312_v3  ;;  %v314_v9 = vunpack.c.h.bf16 %v312_v3 }
   0xb   :  { %v317_v10 = vunpack.c.l.bf16 %v316_v4  ;;  %v318_v11 = vunpack.c.h.bf16 %v316_v4 }
   0xc   :  { %72 = vst [vmem:[#allocation0 + $0x28] sm:$0xff] %v310_v7  ;;  %88 = vst [vmem:[#allocation0 + $0x20] sm:$0xff] %v309_v6 }
   0xd   :  { %104 = vst [vmem:[#allocation0 + $0x18] sm:$0xff] %v314_v9  ;;  %120 = vst [vmem:[#allocation0 + $0x10] sm:$0xff] %v313_v8 }
   0xe   :  { %135 = vst [vmem:[#allocation0 + $0x8] sm:$0xff] %v318_v11  ;;  %148 = vst [vmem:[#allocation0] sm:$0xff] %v317_v10 }
  0x13   :  { %v179_v14 = vld [vmem:[#allocation0 + $0x27] ss:$-1 sm:$0xff]  ;;  %v184_v15 = vld [vmem:[#allocation0 + $0x2f] ss:$-1 sm:$0xff] }
  0x14   :  { %v156_v13 = vld [vmem:[#allocation0 + $0x17] ss:$-1 sm:$0xff]  ;;  %v180_v19 = vrot.slane %v179_v14, 4  ;;  %v185_v23 = vrot.slane %v184_v15, 4  ;;  %v192_v25 = vld [vmem:[#allocation0 + $0x1f] ss:$-1 sm:$0xff] }
  0x15   :  { %v151_v16 = vld [vmem:[#allocation0 + $0xf] ss:$-1 sm:$0xff]  ;;  %v157_v17 = vrot.slane %v156_v13, 4  ;;  %v164_v18 = vld [vmem:[#allocation0 + $0x7] ss:$-1 sm:$0xff]  ;;  %v193_v27 = vrot.slane %v192_v25, 4 }
  0x16   :  { %v152_v20 = vrot.slane %v151_v16, 4  ;;  %v165_v21 = vrot.slane %v164_v18, 4  ;;  %v169_v22 = vld [vmem:[#allocation0 + $0xf] ss:$-1 sm:$0xff]  ;;  %181 = vst [vmem:[#allocation2 + $0x10] sm:$0xff] %v180_v19 }
  0x17   :  { %v170_v24 = vrot.slane %v169_v22, 4  ;;  %v197_v26 = vld [vmem:[#allocation0 + $0x27] ss:$-1 sm:$0xff]  ;;  %189 = vst.msk [vmem:[#allocation2 + $0x10] sm:$0xff] %vm160_vm0, %v185_v23  ;;  %194 = vst [vmem:[#allocation2 + $0x18] sm:$0xff] %v193_v27 }
  0x18   :  { %153 = vst [vmem:[#allocation2] sm:$0xff] %v152_v20  ;;  %166 = vst [vmem:[#allocation2 + $0x8] sm:$0xff] %v165_v21  ;;  %v198_v28 = vrot.slane %v197_v26, 4 }
  0x19   :  { %161 = vst.msk [vmem:[#allocation2] sm:$0xff] %vm160_vm0, %v157_v17  ;;  %174 = vst.msk [vmem:[#allocation2 + $0x8] sm:$0xff] %vm160_vm0, %v170_v24 }
  0x1a   :  { %202 = vst.msk [vmem:[#allocation2 + $0x18] sm:$0xff] %vm160_vm0, %v198_v28 }
  0x1e   :  { %v218_v31 = vld [vmem:[#allocation2 + $0x10] sm:$0xff] }
  0x20   :  { %v207_v29 = vld [vmem:[#allocation2] sm:$0xff]  ;;  %v212_v30 = vld [vmem:[#allocation2 + $0x8] sm:$0xff] }
  0x21   :  { %v322_v32 = vpack.c.bf16 %v212_v30, %v207_v29  ;;  %v225_v33 = vld [vmem:[#allocation2 + $0x18] sm:$0xff] }
  0x22   :  { %v327_v34 = vpack.c.bf16 %v225_v33, %v218_v31 }
  0x23   :  { %323 = vst [vmem:[#allocation3] sm:$0xff] %v322_v32  }
  0x24   :  { %328 = vst [vmem:[#allocation3 + $0x8] sm:$0xff] %v327_v34  }
  0x2a   :  { %v246_v35 = vld [vmem:[#allocation3] sm:$0xff]  }
  0x2b   :  { %247 = vst [vmem:[%s356_s1] sm:$0xff] %v246_v35   ;;  %v250_v36 = vld [vmem:[#allocation3 + $0x8] sm:$0xff]  }
  0x2c   :  { %251 = vst [vmem:[%s356_s1 + $0x8] sm:$0xff] %v250_v36  }

// kernel: _lambda_.1
= control target key start
LH: loop header
LB: loop body
LE: loop exit
PB: predicated region body
PF: predicated region fallthrough
CT: control target
= control target key end

     0   :  { %vm208_vm0 = vcmask 1043456   ;;  %vm209_vm1 = vcmask 1044480   ;;  %v3408_v1 = vmov 65535   ;;  %v3409_v3 = vmov 0   ;;  %s4273_s1 = inlined_call_operand.vmem [shape: bf16[25,384], index: 1, kind: input, shape index: {}]   ;;  %s4274_s0 = inlined_call_operand.vmem [shape: bf16[12,16,25], index: 0, kind: input, shape index: {}]   ;;  %s4275_s3 = inlined_call_operand.vmem [shape: bf16[384,128], index: 3, kind: input, shape index: {}]   ;;  %s4276_s5 = inlined_call_operand.vmem [shape: bf16[1536,128], index: 5, kind: input, shape index: {}]   ;;  %s4277_s2 = inlined_call_operand.vmem [shape: f32[1,384], index: 2, kind: input, shape index: {}]   ;;  %s4278_s4 = inlined_call_operand.vmem [shape: f32[1,128], index: 4, kind: input, shape index: {}]   ;;  %s4279_s7 = inlined_call_operand.vmem [shape: bf16[128,128], index: 7, kind: input, shape index: {}]   ;;  %s4280_s6 = inlined_call_operand.vmem [shape: f32[1,128], index: 6, kind: input, shape index: {}]   ;;  %s4281_s8 = inlined_call_operand.vmem [shape: f32[1,128], index: 8, kind: input, shape index: {}]   ;;  %s4282_s9 = inlined_call_operand.vmem [shape: f32[16,128], index: 9, kind: output, shape index: {}]  }
   0x1   :  { %v3260_v0 = vld [vmem:[%s4273_s1 + $0x4] ss:$12 sps:$4 sm:$0xff]   ;;  %v210_v2 = vsel %vm208_vm0, 4294967295, %v3408_v1  ;;  %253 = vmatprep.mubr.bf16.mxu0 %v3409_v3  ;;  %353 = vmatprep.mubr.bf16.mxu1 %v3409_v3  ;;  %v3262_v4 = vld [vmem:[%s4273_s1] ss:$12 sps:$4 sm:$0xff]   ;;  %vm171_vm2 = vcmask 203776   ;;  %v67_v49 = vlaneseq }
   0x2   :  { %v211_v5 = vsel %vm209_vm1, %v210_v2, 0  ;;  %221 = vmatprep.subr.bf16.mxu0 %v3260_v0  ;;  %3252 = vmatprep.subr.bf16.mxu1 %v3260_v0  ;;  %v3263_v6 = vld [vmem:[%s4273_s1 + $0x1c] ss:$12 sps:$4 sm:$0x1f]   ;;  %v3266_v10 = vld [vmem:[%s4274_s0] sm:$0xff]   ;;  %v3485_v12 = vld [vmem:[%s4274_s0 + $0x50] sm:$0xff]  }
   0x3   :  { %v3265_v7 = vld [vmem:[%s4273_s1 + $0x18] ss:$12 sps:$4 sm:$0x1f]   ;;  %222 = vmatpush1.bf16.msra.mxu0 %v3262_v4  ;;  %3254 = vmatpush1.bf16.msra.mxu1 %v3262_v4  ;;  %v216_v8 = vand.u32 %v3263_v6, %v211_v5  ;;  %v3268_v11 = vld [vmem:[%s4273_s1 + $0x8] ss:$12 sps:$4 sm:$0xff]   ;;  %v3410_v50 = vmov 0.0  }
   0x4   :  { %v213_v9 = vand.u32 %v3265_v7, %v211_v5  ;;  %v3271_v13 = vld [vmem:[%s4273_s1 + $0x20] ss:$12 sps:$4 sm:$0x1f]   ;;  %v3501_v16 = vld [vmem:[%s4274_s0 + $0x58] sm:$0xff]   ;;  %v3272_v20 = vld [vmem:[%s4274_s0 + $0x10] sm:$0xff]   ;;  %v3634_v51 = vshrl.u32 %v67_v49, 7 }
   0x5   :  { %223 = vmatprep.subr.bf16.mxu0 %v216_v8  ;;  %3253 = vmatprep.subr.bf16.mxu1 %v216_v8  ;;  %v219_v14 = vand.u32 %v3271_v13, %v211_v5  ;;  %v3269_v15 = vld [vmem:[%s4274_s0 + $0x8] sm:$0xff]   ;;  %v3280_v17 = vld [vmem:[%s4275_s3 + $0x80] sm:$0xff]   ;;  %v3284_v22 = vld [vmem:[%s4275_s3 + $0x90] sm:$0xff]   ;;  %vm3411_vm3 = vmmov 0  }
   0x6   :  { %v3281_v18 = vld [vmem:[%s4275_s3 + $0x88] sm:$0xff]   ;;  %v3282_v19 = vld [vmem:[%s4275_s3 + $0x40] sm:$0xff]   ;;  %v3287_v24 = vld [vmem:[%s4275_s3 + $0x98] sm:$0xff]   ;;  %v69_v52 = vsub.s32 0, %v3634_v51  ;;  %v73_v53 = vsub.s32 1, %v3634_v51  ;;  %v77_v54 = vsub.s32 2, %v3634_v51 }
   0x7   :  { %224 = vmatpush1.bf16.msra.mxu0 %v213_v9  ;;  %3255 = vmatpush1.bf16.msra.mxu1 %v213_v9  ;;  %v3283_v21 = vld [vmem:[%s4275_s3] sm:$0xff]   ;;  %v3285_v23 = vld [vmem:[%s4275_s3 + $0x48] sm:$0xff]   ;;  %v3288_v26 = vld [vmem:[%s4275_s3 + $0x50] sm:$0xff]  }
   0x8   :  { %2924 = vmatprep.subr.bf16.mxu1 %v3268_v11  ;;  %2952 = vmatprep.subr.bf16.mxu0 %v3280_v17  ;;  %v3286_v25 = vld [vmem:[%s4275_s3 + $0x8] sm:$0xff]   ;;  %v3273_v27 = vld [vmem:[%s4274_s0 + $0x18] sm:$0xff]   ;;  %v3274_v28 = vld [vmem:[%s4274_s0 + $0x20] sm:$0xff]  }
   0x9   :  { %v3289_v29 = vld [vmem:[%s4275_s3 + $0x10] sm:$0xff]   ;;  %v3292_v30 = vld [vmem:[%s4275_s3 + $0xa0] sm:$0xff]   ;;  %v3290_v31 = vld [vmem:[%s4275_s3 + $0x58] sm:$0xff]  }
   0xa   :  { %2530 = vmatmul.mubr.msk.bf16.vlgmr.msra.gmra.mrb[0].mxu0 %vm171_vm2, %v3266_v10  ;;  %2540 = vmatmul.mubr.msk.bf16.vlgmr.msra.gmra.mrb[0].mxu1 %vm171_vm2, %v3485_v12  ;;  %v3291_v32 = vld [vmem:[%s4275_s3 + $0x18] sm:$0xff]   ;;  %v3297_v33 = vld [vmem:[%s4275_s3 + $0xa8] sm:$0xff]   ;;  %v3293_v34 = vld [vmem:[%s4275_s3 + $0x60] sm:$0xff]  }
   0xb   :  { %2925 = vmatpush3.bf16.msra.mxu1 %v3268_v11  ;;  %263 = vmatprep.mubr.bf16.mxu0 %v3409_v3  ;;  %v3275_v35 = vld [vmem:[%s4274_s0 + $0x28] sm:$0xff]   ;;  %v3294_v36 = vld [vmem:[%s4275_s3 + $0x20] sm:$0xff]   ;;  %v3276_v37 = vld [vmem:[%s4274_s0 + $0x30] sm:$0xff]  }
   0xc   :  { %363 = vmatprep.mubr.bf16.mxu1 %v3409_v3  ;;  %2926 = vmatprep.subr.bf16.mxu1 %v219_v14  ;;  %v3295_v38 = vld [vmem:[%s4275_s3 + $0x68] sm:$0xff]   ;;  %v3277_v40 = vld [vmem:[%s4274_s0 + $0x38] sm:$0xff]   ;;  %v3278_v41 = vld [vmem:[%s4274_s0 + $0x40] sm:$0xff]  }
   0xd   :  { %2953 = vmatpush3.bf16.msra.mxu0 %v3280_v17  ;;  %v3296_v39 = vld [vmem:[%s4275_s3 + $0x28] sm:$0xff]   ;;  %v3298_v43 = vld [vmem:[%s4275_s3 + $0x70] sm:$0xff]   ;;  %v3300_v45 = vld [vmem:[%s4275_s3 + $0x78] sm:$0xff]  }
   0xe   :  { %2954 = vmatprep.subr.bf16.mxu0 %v3281_v18  ;;  %v3279_v42 = vld [vmem:[%s4274_s0 + $0x48] sm:$0xff]   ;;  %v3299_v44 = vld [vmem:[%s4275_s3 + $0x30] sm:$0xff]   ;;  %v3302_v46 = vld [vmem:[%s4275_s3 + $0x38] sm:$0xff]  }
   0xf   :  { %2927 = vmatpush3.bf16.msra.mxu1 %v219_v14  ;;  %v3301_v47 = vld [vmem:[%s4275_s3 + $0xb0] sm:$0xff]   ;;  %v3303_v48 = vld [vmem:[%s4275_s3 + $0xb8] sm:$0xff]   ;;  %v65_v55 = vld [vmem:[%s4277_s2] sm:$0x7] }
  0x10   :  { %2699 = vmatprep.subr.bf16.mxu1 %v3282_v19  ;;  %v3642_v56 = vrot.slane %v65_v55, %v69_v52  ;;  %v3644_v57 = vrot.slane %v65_v55, %v73_v53  ;;  %v3306_v49 = vld [vmem:[%s4276_s5 + $0x10] sm:$0xff]  }
  0x11   :  { %2955 = vmatpush3.bf16.msra.mxu0 %v3281_v18  ;;  %v3304_v18 = vld [vmem:[%s4276_s5] sm:$0xff]  }
  0x12   :  { %2531 = vmatmul.mubr.msk.bf16.gmra.mrb[4].mxu0 %vm171_vm2, %v3269_v15  ;;  %2541 = vmatmul.mubr.msk.bf16.gmra.mrb[4].mxu1 %vm171_vm2, %v3501_v16 }
  0x13   :  { %273 = vmatprep.mubr.bf16.mxu0 %v3409_v3  ;;  %2928 = vmatprep.mubr.msk.bf16.mxu1 %vm171_vm2, %v3266_v10 }
  0x14   :  { %2956 = vmatprep.subr.bf16.mxu0 %v3284_v22 }
  0x15   :  { %2957 = vmatpush3.bf16.msra.mxu0 %v3284_v22 }
  0x16   :  { %2958 = vmatprep.subr.bf16.mxu0 %v3287_v24 }
  0x19   :  { %2959 = vmatpush3.bf16.msra.mxu0 %v3287_v24 }
  0x1a   :  { %2532 = vmatmul.mubr.msk.bf16.gmra.mrb[8].mxu0 %vm171_vm2, %v3272_v20  ;;  %2929 = vmatmul.mubr.msk.bf16.vlgmr.msra.gmra.mrb[8].mxu1 %vm171_vm2, %v3269_v15 }
  0x1b   :  { %283 = vmatprep.mubr.bf16.mxu0 %v3409_v3  ;;  %2932 = vmatprep.mubr.msk.bf16.mxu1 %vm171_vm2, %v3272_v20 }
  0x1c   :  { %2700 = vmatpush3.bf16.msra.mxu1 %v3283_v21  ;;  %2960 = vmatprep.subr.bf16.mxu0 %v3292_v30 }
  0x1d   :  { %2701 = vmatprep.subr.bf16.mxu1 %v3285_v23  ;;  %2961 = vmatpush3.bf16.msra.mxu0 %v3292_v30 }
  0x1e   :  { %2962 = vmatprep.subr.bf16.mxu0 %v3297_v33 }
  0x20   :  { %2702 = vmatpush3.bf16.msra.mxu1 %v3286_v25 }
  0x21   :  { %2703 = vmatprep.subr.bf16.mxu1 %v3288_v26  ;;  %2963 = vmatpush3.bf16.msra.mxu0 %v3297_v33  ;;  %v3305_v33 = vld [vmem:[%s4276_s5 + $0x8] sm:$0xff]  }
  0x22   :  { %2533 = vmatmul.mubr.msk.bf16.gmra.mrb[12].mxu0 %vm171_vm2, %v3273_v27  ;;  %2933 = vmatmul.mubr.msk.bf16.gmra.mrb[12].mxu1 %vm171_vm2, %v3273_v27 }
  0x23   :  { %293 = vmatprep.mubr.bf16.mxu0 %v3409_v3  ;;  %2936 = vmatprep.mubr.msk.bf16.mxu1 %vm171_vm2, %v3274_v28 }
  0x24   :  { %2704 = vmatpush3.bf16.msra.mxu1 %v3289_v29  ;;  %2964 = vmatprep.subr.bf16.mxu0 %v3301_v47 }
  0x25   :  { %2705 = vmatprep.subr.bf16.mxu1 %v3290_v31  ;;  %2965 = vmatpush3.bf16.msra.mxu0 %v3301_v47 }
  0x26   :  { %2966 = vmatprep.subr.bf16.mxu0 %v3303_v48 }
  0x28   :  { %2706 = vmatpush3.bf16.msra.mxu1 %v3291_v32 }
  0x29   :  { %2707 = vmatprep.subr.bf16.mxu1 %v3293_v34  ;;  %2967 = vmatpush3.bf16.msra.mxu0 %v3303_v48 }
  0x2a   :  { %2534 = vmatmul.mubr.msk.bf16.gmra.mrb[16].mxu0 %vm171_vm2, %v3274_v28  ;;  %2937 = vmatmul.mubr.msk.bf16.gmra.mrb[16].mxu1 %vm171_vm2, %v3275_v35 }
  0x2b   :  { %303 = vmatprep.mubr.bf16.mxu0 %v3409_v3  ;;  %2940 = vmatprep.mubr.msk.bf16.mxu1 %vm171_vm2, %v3276_v37 }
  0x2c   :  { %2708 = vmatpush3.bf16.msra.mxu1 %v3294_v36  ;;  %2992 = vmatprep.subr.bf16.mxu0 %v3410_v50 }
  0x2d   :  { %2709 = vmatprep.subr.bf16.mxu1 %v3295_v38 }
  0x30   :  { %2710 = vmatpush3.bf16.msra.mxu1 %v3296_v39 }
  0x31   :  { %2711 = vmatprep.subr.bf16.mxu1 %v3298_v43 }
  0x32   :  { %2535 = vmatmul.mubr.msk.bf16.gmra.mrb[20].mxu0 %vm171_vm2, %v3275_v35  ;;  %2941 = vmatmul.mubr.msk.bf16.gmra.mrb[20].mxu1 %vm171_vm2, %v3277_v40 }
  0x33   :  { %313 = vmatprep.mubr.bf16.mxu0 %v3409_v3  ;;  %2944 = vmatprep.mubr.msk.bf16.mxu1 %vm171_vm2, %v3278_v41 }
  0x34   :  { %2712 = vmatpush3.bf16.msra.mxu1 %v3299_v44 }
  0x35   :  { %2713 = vmatprep.subr.bf16.mxu1 %v3300_v45 }
  0x38   :  { %2714 = vmatpush3.bf16.msra.mxu1 %v3302_v46  ;;  %v3672_v46 = vrot.slane %v65_v55, %v77_v54 }
  0x39   :  { %3012 = vmatprep.subr.bf16.mxu1 %v3410_v50 }
  0x3a   :  { %2536 = vmatmul.mubr.msk.bf16.gmra.mrb[24].mxu0 %vm171_vm2, %v3276_v37  ;;  %2945 = vmatmul.mubr.msk.bf16.gmra.mrb[24].mxu1 %vm171_vm2, %v3279_v42 }
  0x3b   :  { %323 = vmatprep.mubr.bf16.mxu0 %v3409_v3  ;;  %2948 = vmatprep.mubr.msk.bf16.mxu1 %vm171_vm2, %v3485_v12 }
  0x42   :  { %2537 = vmatmul.mubr.msk.bf16.gmra.mrb[28].mxu0 %vm171_vm2, %v3277_v40  ;;  %2949 = vmatmul.mubr.msk.bf16.gmra.mrb[28].mxu1 %vm171_vm2, %v3501_v16 }
  0x43   :  { %333 = vmatprep.mubr.bf16.mxu0 %v3409_v3 }
  0x4a   :  { %2538 = vmatmul.mubr.msk.bf16.gmra.mrb[32].mxu0 %vm171_vm2, %v3278_v41 }
  0x4b   :  { %343 = vmatprep.mubr.bf16.mxu0 %v3409_v3 }
  0x52   :  { %2539 = vmatmul.mubr.msk.bf16.gmra.mrb[36].mxu0 %vm171_vm2, %v3279_v42 }
  0xdd   :  { %v255_v58 = vpop.f32.mrb[0].mxu0  ;;  %v355_v59 = vpop.f32.mrb[0].mxu1 }
  0xde   :  { %v256_v60 = vadd.f32 %v255_v58, %v3642_v56  ;;  %v356_v61 = vadd.f32 %v355_v59, %v3642_v56  ;;  %v257_v62 = vpop.f32.mrb[1].mxu0  ;;  %v357_v63 = vpop.f32.mrb[1].mxu1 }
  0xdf   :  { %v258_v0 = vadd.f32 %v257_v62, %v3644_v57  ;;  %v358_v1 = vadd.f32 %v357_v63, %v3644_v57  ;;  %v259_v2 = vpop.f32.mrb[2].mxu0  ;;  %v359_v3 = vpop.f32.mrb[2].mxu1 }
  0xe0   :  { %v503_v4 = vmax.f32 %v256_v60, 0.0  ;;  %v563_v5 = vmax.f32 %v356_v61, 0.0  ;;  %v260_v6 = vadd.f32 %v259_v2, %v3642_v56  ;;  %v360_v7 = vadd.f32 %v359_v3, %v3642_v56  ;;  %v261_v8 = vpop.f32.mrb[3].mxu0  ;;  %v361_v9 = vpop.f32.mrb[3].mxu1  ;;  %v3307_v3 = vld [vmem:[%s4276_s5 + $0x18] sm:$0xff]  }
  0xe1   :  { %v504_v10 = vmax.f32 %v258_v0, 0.0  ;;  %v564_v11 = vmax.f32 %v358_v1, 0.0  ;;  %v262_v12 = vadd.f32 %v261_v8, %v3644_v57  ;;  %v362_v13 = vadd.f32 %v361_v9, %v3644_v57 }
  0xe2   :  { %v506_v14 = vmax.f32 %v260_v6, 0.0  ;;  %v566_v15 = vmax.f32 %v360_v7, 0.0 }
  0xe3   :  { %v507_v16 = vmax.f32 %v262_v12, 0.0  ;;  %v567_v17 = vmax.f32 %v362_v13, 0.0 }
  0xe4   :  { %v575_v19 = vpack.c.bf16 %v506_v14, %v503_v4  ;;  %v3657_v20 = vpack.c.bf16 %v566_v15, %v563_v5 }
  0xe5   :  { %v576_v21 = vpack.c.bf16 %v507_v16, %v504_v10  ;;  %v3659_v22 = vpack.c.bf16 %v567_v17, %v564_v11  ;;  %v265_v23 = vpop.f32.mrb[4].mxu0  ;;  %v365_v24 = vpop.f32.mrb[4].mxu1 }
  0xe6   :  { %v266_v25 = vadd.f32 %v265_v23, %v3642_v56  ;;  %v366_v26 = vadd.f32 %v365_v24, %v3642_v56  ;;  %v267_v27 = vpop.f32.mrb[5].mxu0  ;;  %v367_v28 = vpop.f32.mrb[5].mxu1 }
  0xe7   :  { %v268_v29 = vadd.f32 %v267_v27, %v3644_v57  ;;  %v368_v30 = vadd.f32 %v367_v28, %v3644_v57  ;;  %v269_v31 = vpop.f32.mrb[6].mxu0  ;;  %v369_v32 = vpop.f32.mrb[6].mxu1  ;;  %842 = vmatprep.mubr.bf16.mxu1 %v576_v21 }
  0xe8   :  { %v509_v34 = vmax.f32 %v266_v25, 0.0  ;;  %v569_v35 = vmax.f32 %v366_v26, 0.0  ;;  %v270_v36 = vadd.f32 %v269_v31, %v3642_v56  ;;  %v370_v37 = vadd.f32 %v369_v32, %v3642_v56  ;;  %v271_v38 = vpop.f32.mrb[7].mxu0  ;;  %v371_v39 = vpop.f32.mrb[7].mxu1  ;;  %843 = vmatmul.mubr.bf16.vlgmr.msra.gmra.mrb[32].mxu1 %v575_v19  ;;  %v3309_v19 = vld [vmem:[%s4276_s5 + $0x20] sm:$0xff]  }
  0xe9   :  { %v510_v40 = vmax.f32 %v268_v29, 0.0  ;;  %v570_v41 = vmax.f32 %v368_v30, 0.0  ;;  %v272_v42 = vadd.f32 %v271_v38, %v3644_v57  ;;  %v372_v43 = vadd.f32 %v371_v39, %v3644_v57  ;;  %3013 = vmatpush3.bf16.msra.mxu1 %v3304_v18  ;;  %v3308_v18 = vld [vmem:[%s4276_s5 + $0x40] sm:$0xff]  }
  0xea   :  { %v512_v44 = vmax.f32 %v270_v36, 0.0  ;;  %v572_v45 = vmax.f32 %v370_v37, 0.0  ;;  %3014 = vmatprep.subr.bf16.mxu1 %v3410_v50  ;;  %v3310_v36 = vld [vmem:[%s4276_s5 + $0x48] sm:$0xff]  }
  0xeb   :  { %v513_v47 = vmax.f32 %v272_v42, 0.0  ;;  %v573_v48 = vmax.f32 %v372_v43, 0.0  ;;  %v3312_v37 = vld [vmem:[%s4276_s5 + $0x28] sm:$0xff]  }
  0xec   :  { %v578_v51 = vpack.c.bf16 %v512_v44, %v509_v34  ;;  %v3678_v52 = vpack.c.bf16 %v572_v45, %v569_v35 }
  0xed   :  { %v579_v53 = vpack.c.bf16 %v513_v47, %v510_v40  ;;  %v3680_v58 = vpack.c.bf16 %v573_v48, %v570_v41  ;;  %v275_v59 = vpop.f32.mrb[8].mxu0  ;;  %v2930_v60 = vpop.f32.mrb[8].mxu1  ;;  %3015 = vmatpush3.bf16.msra.mxu1 %v3305_v33 }
  0xee   :  { %v276_v54 = vadd.f32 %v275_v59, %v3642_v56  ;;  %v417_v55 = vadd.f32 %v2930_v60, %v3672_v46  ;;  %v277_v61 = vpop.f32.mrb[9].mxu0  ;;  %v408_v62 = vpop.f32.mrb[9].mxu1  ;;  %3016 = vmatprep.subr.bf16.mxu1 %v3410_v50  ;;  %v3311_v60 = vld [vmem:[%s4276_s5 + $0x50] sm:$0xff]  }
  0xef   :  { %v278_v63 = vadd.f32 %v277_v61, %v3644_v57  ;;  %v409_v0 = vadd.f32 %v408_v62, %v3672_v46  ;;  %v279_v1 = vpop.f32.mrb[10].mxu0  ;;  %v2931_v2 = vpop.f32.mrb[10].mxu1  ;;  %850 = vmatprep.mubr.bf16.mxu1 %v579_v53 }
  0xf0   :  { %v515_v4 = vmax.f32 %v276_v54, 0.0  ;;  %v511_v5 = vmax.f32 %v417_v55, 0.0  ;;  %v280_v6 = vadd.f32 %v279_v1, %v3642_v56  ;;  %v420_v7 = vadd.f32 %v2931_v2, %v3672_v46  ;;  %v281_v8 = vpop.f32.mrb[11].mxu0  ;;  %v411_v9 = vpop.f32.mrb[11].mxu1  ;;  %851 = vmatmul.mubr.bf16.gmra.mrb[36].mxu1 %v578_v51 }
  0xf1   :  { %v516_v10 = vmax.f32 %v278_v63, 0.0  ;;  %v505_v11 = vmax.f32 %v409_v0, 0.0  ;;  %v282_v12 = vadd.f32 %v281_v8, %v3644_v57  ;;  %v412_v13 = vadd.f32 %v411_v9, %v3672_v46  ;;  %3017 = vmatpush3.bf16.msra.mxu1 %v3306_v49  ;;  %v3313_v9 = vld [vmem:[%s4276_s5 + $0x58] sm:$0xff]  }
  0xf2   :  { %v518_v14 = vmax.f32 %v280_v6, 0.0  ;;  %v514_v15 = vmax.f32 %v420_v7, 0.0  ;;  %3018 = vmatprep.subr.bf16.mxu1 %v3410_v50 }
  0xf3   :  { %v519_v16 = vmax.f32 %v282_v12, 0.0  ;;  %v508_v17 = vmax.f32 %v412_v13, 0.0 }
  0xf4   :  { %v581_v21 = vpack.c.bf16 %v518_v14, %v515_v4  ;;  %v580_v23 = vpack.c.bf16 %v514_v15, %v511_v5 }
  0xf5   :  { %v582_v24 = vpack.c.bf16 %v519_v16, %v516_v10  ;;  %v577_v25 = vpack.c.bf16 %v508_v17, %v505_v11  ;;  %v285_v26 = vpop.f32.mrb[12].mxu0  ;;  %v2934_v27 = vpop.f32.mrb[12].mxu1  ;;  %3019 = vmatpush3.bf16.msra.mxu1 %v3307_v3 }
  0xf6   :  { %v286_v28 = vadd.f32 %v285_v26, %v3642_v56  ;;  %v287_v29 = vpop.f32.mrb[13].mxu0  ;;  %v433_v30 = vadd.f32 %v2934_v27, %v3672_v46  ;;  %v424_v31 = vpop.f32.mrb[13].mxu1  ;;  %3020 = vmatprep.subr.bf16.mxu1 %v3410_v50 }
  0xf7   :  { %v288_v32 = vadd.f32 %v287_v29, %v3644_v57  ;;  %v289_v33 = vpop.f32.mrb[14].mxu0  ;;  %858 = vmatprep.mubr.bf16.mxu1 %v582_v24  ;;  %2968 = vmatprep.mubr.bf16.mxu0 %v577_v25  ;;  %v425_v34 = vadd.f32 %v424_v31, %v3672_v46  ;;  %v2935_v35 = vpop.f32.mrb[14].mxu1 }
  0xf8   :  { %v521_v38 = vmax.f32 %v286_v28, 0.0  ;;  %v290_v39 = vadd.f32 %v289_v33, %v3642_v56  ;;  %v291_v40 = vpop.f32.mrb[15].mxu0  ;;  %859 = vmatmul.mubr.bf16.gmra.mrb[40].mxu1 %v581_v21  ;;  %2969 = vmatmul.mubr.bf16.vlgmr.msra.gmra.mrb[40].mxu0 %v580_v23  ;;  %v523_v41 = vmax.f32 %v433_v30, 0.0  ;;  %v436_v42 = vadd.f32 %v2935_v35, %v3672_v46  ;;  %v427_v43 = vpop.f32.mrb[15].mxu1 }
  0xf9   :  { %v522_v44 = vmax.f32 %v288_v32, 0.0  ;;  %v292_v45 = vadd.f32 %v291_v40, %v3644_v57  ;;  %v517_v47 = vmax.f32 %v425_v34, 0.0  ;;  %v428_v48 = vadd.f32 %v427_v43, %v3672_v46  ;;  %2993 = vmatpush3.bf16.msra.mxu0 %v3308_v18  ;;  %3021 = vmatpush3.bf16.msra.mxu1 %v3309_v19 }
  0xfa   :  { %v524_v49 = vmax.f32 %v290_v39, 0.0  ;;  %v526_v51 = vmax.f32 %v436_v42, 0.0  ;;  %2994 = vmatprep.subr.bf16.mxu0 %v3410_v50  ;;  %3022 = vmatprep.subr.bf16.mxu1 %v3410_v50 }
  0xfb   :  { %v525_v53 = vmax.f32 %v292_v45, 0.0  ;;  %v520_v59 = vmax.f32 %v428_v48, 0.0 }
  0xfc   :  { %v584_v54 = vpack.c.bf16 %v524_v49, %v521_v38  ;;  %v586_v55 = vpack.c.bf16 %v526_v51, %v523_v41 }
  0xfd   :  { %v585_v61 = vpack.c.bf16 %v525_v53, %v522_v44  ;;  %v295_v62 = vpop.f32.mrb[16].mxu0  ;;  %v583_v63 = vpack.c.bf16 %v520_v59, %v517_v47  ;;  %v2938_v0 = vpop.f32.mrb[16].mxu1  ;;  %2995 = vmatpush3.bf16.msra.mxu0 %v3310_v36  ;;  %3023 = vmatpush3.bf16.msra.mxu1 %v3312_v37 }
  0xfe   :  { %v296_v1 = vadd.f32 %v295_v62, %v3642_v56  ;;  %v297_v2 = vpop.f32.mrb[17].mxu0  ;;  %v449_v3 = vadd.f32 %v2938_v0, %v3672_v46  ;;  %v440_v4 = vpop.f32.mrb[17].mxu1  ;;  %2996 = vmatprep.subr.bf16.mxu0 %v3410_v50  ;;  %3024 = vmatprep.subr.bf16.mxu1 %v3410_v50 }
  0xff   :  { %v298_v5 = vadd.f32 %v297_v2, %v3644_v57  ;;  %v299_v6 = vpop.f32.mrb[18].mxu0  ;;  %866 = vmatprep.mubr.bf16.mxu1 %v585_v61  ;;  %2972 = vmatprep.mubr.bf16.mxu0 %v583_v63  ;;  %v441_v7 = vadd.f32 %v440_v4, %v3672_v46  ;;  %v2939_v8 = vpop.f32.mrb[18].mxu1 }
 0x100   :  { %v527_v10 = vmax.f32 %v296_v1, 0.0  ;;  %v300_v11 = vadd.f32 %v299_v6, %v3642_v56  ;;  %v301_v12 = vpop.f32.mrb[19].mxu0  ;;  %867 = vmatmul.mubr.bf16.gmra.mrb[44].mxu1 %v584_v54  ;;  %2973 = vmatmul.mubr.bf16.gmra.mrb[44].mxu0 %v586_v55  ;;  %v535_v13 = vmax.f32 %v449_v3, 0.0  ;;  %v452_v14 = vadd.f32 %v2939_v8, %v3672_v46  ;;  %v443_v15 = vpop.f32.mrb[19].mxu1 }
 0x101   :  { %v528_v16 = vmax.f32 %v298_v5, 0.0  ;;  %v302_v17 = vadd.f32 %v301_v12, %v3644_v57  ;;  %v529_v18 = vmax.f32 %v441_v7, 0.0  ;;  %v444_v19 = vadd.f32 %v443_v15, %v3672_v46  ;;  %2997 = vmatpush3.bf16.msra.mxu0 %v3311_v60 }
 0x102   :  { %v530_v21 = vmax.f32 %v300_v11, 0.0  ;;  %v538_v23 = vmax.f32 %v452_v14, 0.0  ;;  %2998 = vmatprep.subr.bf16.mxu0 %v3410_v50 }
 0x103   :  { %v531_v24 = vmax.f32 %v302_v17, 0.0  ;;  %v532_v25 = vmax.f32 %v444_v19, 0.0 }
 0x104   :  { %v587_v26 = vpack.c.bf16 %v530_v21, %v527_v10  ;;  %v592_v27 = vpack.c.bf16 %v538_v23, %v535_v13 }
 0x105   :  { %v588_v28 = vpack.c.bf16 %v531_v24, %v528_v16  ;;  %v305_v29 = vpop.f32.mrb[20].mxu0  ;;  %v589_v30 = vpack.c.bf16 %v532_v25, %v529_v18  ;;  %v2942_v31 = vpop.f32.mrb[20].mxu1  ;;  %2999 = vmatpush3.bf16.msra.mxu0 %v3313_v9 }
 0x106   :  { %v306_v32 = vadd.f32 %v305_v29, %v3642_v56  ;;  %v307_v33 = vpop.f32.mrb[21].mxu0  ;;  %v465_v34 = vadd.f32 %v2942_v31, %v3672_v46  ;;  %v456_v35 = vpop.f32.mrb[21].mxu1  ;;  %3000 = vmatprep.subr.bf16.mxu0 %v3410_v50 }
 0x107   :  { %v308_v36 = vadd.f32 %v307_v33, %v3644_v57  ;;  %v309_v37 = vpop.f32.mrb[22].mxu0  ;;  %874 = vmatprep.mubr.bf16.mxu1 %v588_v28  ;;  %v457_v38 = vadd.f32 %v456_v35, %v3672_v46  ;;  %v2943_v39 = vpop.f32.mrb[22].mxu1  ;;  %2976 = vmatprep.mubr.bf16.mxu0 %v589_v30 }
 0x108   :  { %v533_v40 = vmax.f32 %v306_v32, 0.0  ;;  %v310_v41 = vadd.f32 %v309_v37, %v3642_v56  ;;  %v311_v42 = vpop.f32.mrb[23].mxu0  ;;  %875 = vmatmul.mubr.bf16.gmra.mrb[48].mxu1 %v587_v26  ;;  %v547_v43 = vmax.f32 %v465_v34, 0.0  ;;  %v468_v44 = vadd.f32 %v2943_v39, %v3672_v46  ;;  %v459_v45 = vpop.f32.mrb[23].mxu1  ;;  %2977 = vmatmul.mubr.bf16.gmra.mrb[48].mxu0 %v592_v27 }
 0x109   :  { %v534_v47 = vmax.f32 %v308_v36, 0.0  ;;  %v312_v48 = vadd.f32 %v311_v42, %v3644_v57  ;;  %v541_v49 = vmax.f32 %v457_v38, 0.0  ;;  %v460_v51 = vadd.f32 %v459_v45, %v3672_v46 }
 0x10a   :  { %v536_v53 = vmax.f32 %v310_v41, 0.0  ;;  %v550_v59 = vmax.f32 %v468_v44, 0.0 }
 0x10b   :  { %v537_v60 = vmax.f32 %v312_v48, 0.0  ;;  %v544_v54 = vmax.f32 %v460_v51, 0.0 }
 0x10c   :  { %v590_v55 = vpack.c.bf16 %v536_v53, %v533_v40  ;;  %v598_v61 = vpack.c.bf16 %v550_v59, %v547_v43 }
 0x10d   :  { %v591_v62 = vpack.c.bf16 %v537_v60, %v534_v47  ;;  %v315_v63 = vpop.f32.mrb[24].mxu0  ;;  %v595_v0 = vpack.c.bf16 %v544_v54, %v541_v49  ;;  %v2946_v1 = vpop.f32.mrb[24].mxu1 }
 0x10e   :  { %v316_v2 = vadd.f32 %v315_v63, %v3642_v56  ;;  %v317_v3 = vpop.f32.mrb[25].mxu0  ;;  %v481_v4 = vadd.f32 %v2946_v1, %v3672_v46  ;;  %v472_v5 = vpop.f32.mrb[25].mxu1 }
 0x10f   :  { %v318_v6 = vadd.f32 %v317_v3, %v3644_v57  ;;  %v319_v7 = vpop.f32.mrb[26].mxu0  ;;  %882 = vmatprep.mubr.bf16.mxu1 %v591_v62  ;;  %v473_v8 = vadd.f32 %v472_v5, %v3672_v46  ;;  %v2947_v9 = vpop.f32.mrb[26].mxu1  ;;  %2980 = vmatprep.mubr.bf16.mxu0 %v595_v0 }
 0x110   :  { %v539_v10 = vmax.f32 %v316_v2, 0.0  ;;  %v320_v11 = vadd.f32 %v319_v7, %v3642_v56  ;;  %v321_v12 = vpop.f32.mrb[27].mxu0  ;;  %883 = vmatmul.mubr.bf16.gmra.mrb[52].mxu1 %v590_v55  ;;  %v559_v13 = vmax.f32 %v481_v4, 0.0  ;;  %v484_v14 = vadd.f32 %v2947_v9, %v3672_v46  ;;  %v475_v15 = vpop.f32.mrb[27].mxu1  ;;  %2981 = vmatmul.mubr.bf16.gmra.mrb[52].mxu0 %v598_v61 }
 0x111   :  { %v540_v16 = vmax.f32 %v318_v6, 0.0  ;;  %v322_v17 = vadd.f32 %v321_v12, %v3644_v57  ;;  %v553_v18 = vmax.f32 %v473_v8, 0.0  ;;  %v476_v19 = vadd.f32 %v475_v15, %v3672_v46 }
 0x112   :  { %v542_v21 = vmax.f32 %v320_v11, 0.0  ;;  %v562_v23 = vmax.f32 %v484_v14, 0.0 }
 0x113   :  { %v543_v24 = vmax.f32 %v322_v17, 0.0  ;;  %v556_v25 = vmax.f32 %v476_v19, 0.0 }
 0x114   :  { %v593_v26 = vpack.c.bf16 %v542_v21, %v539_v10  ;;  %v604_v27 = vpack.c.bf16 %v562_v23, %v559_v13 }
 0x115   :  { %v594_v28 = vpack.c.bf16 %v543_v24, %v540_v16  ;;  %v325_v29 = vpop.f32.mrb[28].mxu0  ;;  %v601_v30 = vpack.c.bf16 %v556_v25, %v553_v18  ;;  %v2950_v31 = vpop.f32.mrb[28].mxu1 }
 0x116   :  { %v326_v32 = vadd.f32 %v325_v29, %v3642_v56  ;;  %v327_v33 = vpop.f32.mrb[29].mxu0  ;;  %v497_v34 = vadd.f32 %v2950_v31, %v3672_v46  ;;  %v488_v35 = vpop.f32.mrb[29].mxu1 }
 0x117   :  { %v328_v36 = vadd.f32 %v327_v33, %v3644_v57  ;;  %v329_v37 = vpop.f32.mrb[30].mxu0  ;;  %890 = vmatprep.mubr.bf16.mxu1 %v594_v28  ;;  %v489_v38 = vadd.f32 %v488_v35, %v3672_v46  ;;  %v2951_v39 = vpop.f32.mrb[30].mxu1  ;;  %2984 = vmatprep.mubr.bf16.mxu0 %v601_v30 }
 0x118   :  { %v545_v40 = vmax.f32 %v326_v32, 0.0  ;;  %v330_v41 = vadd.f32 %v329_v37, %v3642_v56  ;;  %v331_v42 = vpop.f32.mrb[31].mxu0  ;;  %891 = vmatmul.mubr.bf16.gmra.mrb[56].mxu1 %v593_v26  ;;  %v571_v43 = vmax.f32 %v497_v34, 0.0  ;;  %v500_v44 = vadd.f32 %v2951_v39, %v3672_v46  ;;  %v491_v45 = vpop.f32.mrb[31].mxu1  ;;  %2985 = vmatmul.mubr.bf16.gmra.mrb[56].mxu0 %v604_v27 }
 0x119   :  { %v546_v47 = vmax.f32 %v328_v36, 0.0  ;;  %v332_v48 = vadd.f32 %v331_v42, %v3644_v57  ;;  %v565_v49 = vmax.f32 %v489_v38, 0.0  ;;  %v492_v51 = vadd.f32 %v491_v45, %v3672_v46 }
 0x11a   :  { %v548_v53 = vmax.f32 %v330_v41, 0.0  ;;  %v574_v59 = vmax.f32 %v500_v44, 0.0  ;;  %v3803_v41 = vld [vmem:[%s4278_s4] ss:$0 sm:$0xff] }
 0x11b   :  { %v549_v60 = vmax.f32 %v332_v48, 0.0  ;;  %v568_v54 = vmax.f32 %v492_v51, 0.0 }
 0x11c   :  { %v596_v55 = vpack.c.bf16 %v548_v53, %v545_v40  ;;  %v610_v61 = vpack.c.bf16 %v574_v59, %v571_v43 }
 0x11d   :  { %v597_v62 = vpack.c.bf16 %v549_v60, %v546_v47  ;;  %v335_v63 = vpop.f32.mrb[32].mxu0  ;;  %v607_v0 = vpack.c.bf16 %v568_v54, %v565_v49 }
 0x11e   :  { %v336_v1 = vadd.f32 %v335_v63, %v3642_v56  ;;  %v337_v2 = vpop.f32.mrb[33].mxu0 }
 0x11f   :  { %v338_v3 = vadd.f32 %v337_v2, %v3644_v57  ;;  %v339_v4 = vpop.f32.mrb[34].mxu0  ;;  %898 = vmatprep.mubr.bf16.mxu1 %v597_v62  ;;  %2988 = vmatprep.mubr.bf16.mxu0 %v607_v0 }
 0x120   :  { %v551_v5 = vmax.f32 %v336_v1, 0.0  ;;  %v340_v46 = vadd.f32 %v339_v4, %v3642_v56  ;;  %v341_v6 = vpop.f32.mrb[35].mxu0  ;;  %899 = vmatmul.mubr.bf16.gmra.mrb[60].mxu1 %v596_v55  ;;  %2989 = vmatmul.mubr.bf16.gmra.mrb[60].mxu0 %v610_v61 }
 0x121   :  { %v552_v7 = vmax.f32 %v338_v3, 0.0  ;;  %v342_v8 = vadd.f32 %v341_v6, %v3644_v57  ;;  %3008 = vmatprep.mubr.msk.bf16.mxu0 %vm3411_vm3, %v3410_v50 }
 0x122   :  { %v554_v9 = vmax.f32 %v340_v46, 0.0  ;;  %v3320_v46 = vld [vmem:[%s4276_s5 + $0x80] sm:$0xff]  }
 0x123   :  { %v555_v10 = vmax.f32 %v342_v8, 0.0  ;;  %v3321_v8 = vld [vmem:[%s4276_s5 + $0xc0] sm:$0xff]  }
 0x124   :  { %v599_v11 = vpack.c.bf16 %v554_v9, %v551_v5 }
 0x125   :  { %v600_v12 = vpack.c.bf16 %v555_v10, %v552_v7  ;;  %v345_v13 = vpop.f32.mrb[36].mxu0 }
 0x126   :  { %v346_v14 = vadd.f32 %v345_v13, %v3642_v56  ;;  %v347_v15 = vpop.f32.mrb[37].mxu0 }
 0x127   :  { %v348_v16 = vadd.f32 %v347_v15, %v3644_v57  ;;  %v349_v17 = vpop.f32.mrb[38].mxu0  ;;  %906 = vmatprep.mubr.bf16.mxu1 %v600_v12  ;;  %v3322_v15 = vld [vmem:[%s4276_s5 + $0x88] sm:$0xff]  }
 0x128   :  { %v557_v18 = vmax.f32 %v346_v14, 0.0  ;;  %v350_v19 = vadd.f32 %v349_v17, %v3642_v56  ;;  %v351_v21 = vpop.f32.mrb[39].mxu0  ;;  %907 = vmatmul.mubr.bf16.gmra.mrb[64].mxu1 %v599_v11  ;;  %v3314_v56 = vld [vmem:[%s4276_s5 + $0x60] sm:$0xff]  }
 0x129   :  { %v558_v23 = vmax.f32 %v348_v16, 0.0  ;;  %v352_v24 = vadd.f32 %v351_v21, %v3644_v57  ;;  %3001 = vmatpush3.bf16.msra.mxu0 %v3314_v56  ;;  %v3315_v57 = vld [vmem:[%s4276_s5 + $0x30] sm:$0xff]   ;;  %v3323_v21 = vld [vmem:[%s4276_s5 + $0xc8] sm:$0xff]  }
 0x12a   :  { %v560_v25 = vmax.f32 %v350_v19, 0.0  ;;  %3002 = vmatprep.subr.bf16.mxu0 %v3410_v50  ;;  %3025 = vmatpush3.bf16.msra.mxu1 %v3315_v57  ;;  %v3324_v56 = vld [vmem:[%s4276_s5 + $0x90] sm:$0xff]  }
 0x12b   :  { %v561_v26 = vmax.f32 %v352_v24, 0.0  ;;  %3026 = vmatprep.subr.bf16.mxu1 %v3410_v50 }
 0x12c   :  { %v602_v27 = vpack.c.bf16 %v560_v25, %v557_v18 }
 0x12d   :  { %v603_v28 = vpack.c.bf16 %v561_v26, %v558_v23 }
 0x12f   :  { %914 = vmatprep.mubr.bf16.mxu1 %v603_v28 }
 0x130   :  { %915 = vmatmul.mubr.bf16.gmra.mrb[68].mxu1 %v602_v27 }
 0x131   :  { %922 = vmatprep.mubr.bf16.mxu1 %v3659_v22  ;;  %v3317_v22 = vld [vmem:[%s4276_s5 + $0x70] sm:$0xff]  }
 0x138   :  { %923 = vmatmul.mubr.bf16.gmra.mrb[72].mxu1 %v3657_v20  ;;  %v3316_v20 = vld [vmem:[%s4276_s5 + $0x68] sm:$0xff]  }
 0x139   :  { %930 = vmatprep.mubr.bf16.mxu1 %v3680_v58  ;;  %3003 = vmatpush3.bf16.msra.mxu0 %v3316_v20  ;;  %v3319_v58 = vld [vmem:[%s4276_s5 + $0x78] sm:$0xff]  }
 0x13a   :  { %3004 = vmatprep.subr.bf16.mxu0 %v3410_v50 }
 0x13d   :  { %3005 = vmatpush3.bf16.msra.mxu0 %v3317_v22 }
 0x13e   :  { %3006 = vmatprep.subr.bf16.mxu0 %v3410_v50 }
 0x140   :  { %931 = vmatmul.mubr.bf16.gmra.mrb[76].mxu1 %v3678_v52  ;;  %v3318_v52 = vld [vmem:[%s4276_s5 + $0x38] sm:$0xff]  }
 0x141   :  { %3027 = vmatpush3.bf16.msra.mxu1 %v3318_v52  ;;  %3007 = vmatpush3.bf16.msra.mxu0 %v3319_v58  ;;  %v3325_v52 = vld [vmem:[%s4276_s5 + $0xd0] sm:$0xff]  }
 0x142   :  { %3032 = vmatprep.subr.bf16.mxu0 %v3410_v50  ;;  %3052 = vmatprep.subr.bf16.mxu1 %v3410_v50 }
 0x143   :  { %3028 = vmatprep.mubr.msk.bf16.mxu1 %vm3411_vm3, %v3410_v50 }
 0x1bb   :  { %v2715_v29 = vpop.f32.mrb[32].mxu1 }
 0x1bc   :  { %v2716_v30 = vpop.f32.mrb[33].mxu1 }
 0x1bd   :  { %v2717_v31 = vadd.f32 %v2716_v30, %v2715_v29  ;;  %v2718_v32 = vpop.f32.mrb[34].mxu1 }
 0x1be   :  { %v2719_v33 = vpop.f32.mrb[35].mxu1 }
 0x1bf   :  { %v2720_v34 = vadd.f32 %v2719_v33, %v2718_v32  ;;  %v845_v44 = vadd.f32 %v2717_v31, %v3803_v41 }
 0x1c1   :  { %v848_v60 = vadd.f32 %v2720_v34, %v3803_v41 }
 0x1c3   :  { %v2721_v35 = vpop.f32.mrb[36].mxu1 }
 0x1c4   :  { %v2722_v36 = vpop.f32.mrb[37].mxu1 }
 0x1c5   :  { %v2723_v37 = vadd.f32 %v2722_v36, %v2721_v35  ;;  %v2724_v38 = vpop.f32.mrb[38].mxu1  ;;  %v3326_v35 = vld [vmem:[%s4276_s5 + $0x98] sm:$0xff]  }
 0x1c6   :  { %v2725_v39 = vpop.f32.mrb[39].mxu1 }
 0x1c7   :  { %v2726_v40 = vadd.f32 %v2725_v39, %v2724_v38  ;;  %v853_v42 = vadd.f32 %v2723_v37, %v3803_v41 }
 0x1c9   :  { %v856_v49 = vadd.f32 %v2726_v40, %v3803_v41  ;;  %v3327_v40 = vld [vmem:[%s4276_s5 + $0xd8] sm:$0xff]  }
 0x1cb   :  { %v2970_v43 = vpop.f32.mrb[40].mxu0  ;;  %v2727_v45 = vpop.f32.mrb[40].mxu1 }
 0x1cc   :  { %v982_v47 = vadd.f32 %v2970_v43, %v853_v42  ;;  %v973_v48 = vpop.f32.mrb[41].mxu0  ;;  %v2728_v51 = vpop.f32.mrb[41].mxu1 }
 0x1cd   :  { %v974_v53 = vadd.f32 %v973_v48, %v845_v44  ;;  %v2971_v59 = vpop.f32.mrb[42].mxu0  ;;  %v2729_v54 = vadd.f32 %v2728_v51, %v2727_v45  ;;  %v2730_v55 = vpop.f32.mrb[42].mxu1  ;;  %v3328_v48 = vld [vmem:[%s4276_s5 + $0xa0] sm:$0xff]  }
 0x1ce   :  { %v985_v61 = vadd.f32 %v2971_v59, %v856_v49  ;;  %v976_v62 = vpop.f32.mrb[43].mxu0  ;;  %v2731_v63 = vpop.f32.mrb[43].mxu1  ;;  %v1070_v2 = vmax.f32 %v982_v47, 0.0 }
 0x1cf   :  { %v977_v0 = vadd.f32 %v976_v62, %v848_v60  ;;  %v2732_v1 = vadd.f32 %v2731_v63, %v2730_v55  ;;  %v1068_v4 = vmax.f32 %v974_v53, 0.0  ;;  %v861_v6 = vadd.f32 %v2729_v54, %v3803_v41  ;;  %v3329_v53 = vld [vmem:[%s4276_s5 + $0xe0] sm:$0xff]   ;;  %v3330_v63 = vld [vmem:[%s4276_s5 + $0xa8] sm:$0xff]  }
 0x1d0   :  { %v1071_v3 = vmax.f32 %v985_v61, 0.0 }
 0x1d1   :  { %v1069_v5 = vmax.f32 %v977_v0, 0.0  ;;  %v864_v12 = vadd.f32 %v2732_v1, %v3803_v41 }
 0x1d2   :  { %v1093_v7 = vpack.c.bf16 %v1071_v3, %v1070_v2 }
 0x1d3   :  { %v1092_v9 = vpack.c.bf16 %v1069_v5, %v1068_v4  ;;  %v2974_v10 = vpop.f32.mrb[44].mxu0  ;;  %v2733_v11 = vpop.f32.mrb[44].mxu1  ;;  %v3331_v4 = vld [vmem:[%s4276_s5 + $0xe8] sm:$0xff]  }
 0x1d4   :  { %3009 = vmatmul.mubr.bf16.vlgmr.msra.gmra.mrb[64].mxu0 %v1093_v7  ;;  %v989_v13 = vpop.f32.mrb[45].mxu0  ;;  %v2734_v14 = vpop.f32.mrb[45].mxu1 }
 0x1d5   :  { %3033 = vmatpush3.bf16.msra.mxu0 %v3320_v46  ;;  %3029 = vmatmul.mubr.bf16.vlgmr.msra.gmra.mrb[80].mxu1 %v1092_v9  ;;  %v990_v16 = vadd.f32 %v989_v13, %v861_v6  ;;  %v2975_v17 = vpop.f32.mrb[46].mxu0  ;;  %v2735_v18 = vadd.f32 %v2734_v14, %v2733_v11  ;;  %v2736_v19 = vpop.f32.mrb[46].mxu1  ;;  %v3332_v9 = vld [vmem:[%s4276_s5 + $0xb0] sm:$0xff]  }
 0x1d6   :  { %3053 = vmatpush3.bf16.msra.mxu1 %v3321_v8  ;;  %3034 = vmatprep.subr.bf16.mxu0 %v3410_v50  ;;  %v992_v23 = vpop.f32.mrb[47].mxu0  ;;  %v2737_v24 = vpop.f32.mrb[47].mxu1 }
 0x1d7   :  { %3054 = vmatprep.subr.bf16.mxu1 %v3410_v50  ;;  %v1072_v25 = vmax.f32 %v990_v16, 0.0  ;;  %v869_v26 = vadd.f32 %v2735_v18, %v3803_v41  ;;  %v993_v27 = vadd.f32 %v992_v23, %v864_v12  ;;  %v2738_v28 = vadd.f32 %v2737_v24, %v2736_v19  ;;  %3048 = vmatprep.mubr.msk.bf16.mxu0 %vm3411_vm3, %v3410_v50  ;;  %v3333_v12 = vld [vmem:[%s4276_s5 + $0xf0] sm:$0xff]   ;;  %v3334_v19 = vld [vmem:[%s4276_s5 + $0xb8] sm:$0xff]  }
 0x1d8   :  { %3068 = vmatprep.mubr.msk.bf16.mxu1 %vm3411_vm3, %v3410_v50 }
 0x1d9   :  { %3035 = vmatpush3.bf16.msra.mxu0 %v3322_v15  ;;  %v998_v57 = vadd.f32 %v2974_v10, %v869_v26  ;;  %v1073_v20 = vmax.f32 %v993_v27, 0.0  ;;  %v872_v22 = vadd.f32 %v2738_v28, %v3803_v41  ;;  %v3335_v26 = vld [vmem:[%s4276_s5 + $0xf8] sm:$0xff]  }
 0x1da   :  { %3055 = vmatpush3.bf16.msra.mxu1 %v3323_v21  ;;  %3036 = vmatprep.subr.bf16.mxu0 %v3410_v50 }
 0x1db   :  { %3056 = vmatprep.subr.bf16.mxu1 %v3410_v50  ;;  %v1074_v58 = vmax.f32 %v998_v57, 0.0  ;;  %v3839_v29 = vpack.c.bf16 %v1073_v20, %v1072_v25  ;;  %v1001_v30 = vadd.f32 %v2975_v17, %v872_v22  ;;  %v2739_v31 = vpop.f32.mrb[48].mxu1  ;;  %v2978_v32 = vpop.f32.mrb[48].mxu0  ;;  %v3336_v22 = vld [vmem:[%s4276_s5 + $0x100] sm:$0xff]  }
 0x1dc   :  { %v2740_v33 = vpop.f32.mrb[49].mxu1  ;;  %v1005_v34 = vpop.f32.mrb[49].mxu0 }
 0x1dd   :  { %3037 = vmatpush3.bf16.msra.mxu0 %v3324_v56  ;;  %v1075_v36 = vmax.f32 %v1001_v30, 0.0  ;;  %v2741_v37 = vadd.f32 %v2740_v33, %v2739_v31  ;;  %v2742_v38 = vpop.f32.mrb[50].mxu1  ;;  %v2979_v39 = vpop.f32.mrb[50].mxu0  ;;  %v3337_v30 = vld [vmem:[%s4276_s5 + $0x140] sm:$0xff]  }
 0x1de   :  { %3057 = vmatpush3.bf16.msra.mxu1 %v3325_v52  ;;  %3038 = vmatprep.subr.bf16.mxu0 %v3410_v50  ;;  %v2743_v42 = vpop.f32.mrb[51].mxu1  ;;  %v1008_v43 = vpop.f32.mrb[51].mxu0 }
 0x1df   :  { %3058 = vmatprep.subr.bf16.mxu1 %v3410_v50  ;;  %v3849_v44 = vpack.c.bf16 %v1075_v36, %v1074_v58  ;;  %v2744_v45 = vadd.f32 %v2743_v42, %v2742_v38  ;;  %v877_v47 = vadd.f32 %v2741_v37, %v3803_v41  ;;  %v3338_v37 = vld [vmem:[%s4276_s5 + $0x108] sm:$0xff]  }
 0x1e1   :  { %3039 = vmatpush3.bf16.msra.mxu0 %v3326_v35  ;;  %v1006_v49 = vadd.f32 %v1005_v34, %v877_v47  ;;  %v880_v51 = vadd.f32 %v2744_v45, %v3803_v41 }
 0x1e2   :  { %3059 = vmatpush3.bf16.msra.mxu1 %v3327_v40  ;;  %3040 = vmatprep.subr.bf16.mxu0 %v3410_v50 }
 0x1e3   :  { %3060 = vmatprep.subr.bf16.mxu1 %v3410_v50  ;;  %v2745_v59 = vpop.f32.mrb[52].mxu1  ;;  %v1076_v60 = vmax.f32 %v1006_v49, 0.0  ;;  %v1009_v54 = vadd.f32 %v1008_v43, %v880_v51  ;;  %v3861_v55 = vpop.f32.mrb[52].mxu0  ;;  %v3340_v49 = vld [vmem:[%s4276_s5 + $0x110] sm:$0xff]  }
 0x1e4   :  { %v2746_v61 = vpop.f32.mrb[53].mxu1  ;;  %v1021_v62 = vpop.f32.mrb[53].mxu0 }
 0x1e5   :  { %3041 = vmatpush3.bf16.msra.mxu0 %v3328_v48  ;;  %v2747_v0 = vadd.f32 %v2746_v61, %v2745_v59  ;;  %v2748_v1 = vpop.f32.mrb[54].mxu1  ;;  %v1077_v2 = vmax.f32 %v1009_v54, 0.0  ;;  %v3866_v3 = vpop.f32.mrb[54].mxu0  ;;  %v3341_v59 = vld [vmem:[%s4276_s5 + $0x150] sm:$0xff]  }
 0x1e6   :  { %3061 = vmatpush3.bf16.msra.mxu1 %v3329_v53  ;;  %3042 = vmatprep.subr.bf16.mxu0 %v3410_v50  ;;  %v2749_v5 = vpop.f32.mrb[55].mxu1  ;;  %v1024_v46 = vpop.f32.mrb[55].mxu0 }
 0x1e7   :  { %3062 = vmatprep.subr.bf16.mxu1 %v3410_v50  ;;  %v2750_v6 = vadd.f32 %v2749_v5, %v2748_v1  ;;  %v885_v7 = vadd.f32 %v2747_v0, %v3803_v41  ;;  %v3874_v8 = vpack.c.bf16 %v1077_v2, %v1076_v60  ;;  %v3343_v2 = vld [vmem:[%s4276_s5 + $0x158] sm:$0xff]  }
 0x1e9   :  { %3043 = vmatpush3.bf16.msra.mxu0 %v3330_v63  ;;  %v1014_v10 = vadd.f32 %v2978_v32, %v885_v7  ;;  %v888_v11 = vadd.f32 %v2750_v6, %v3803_v41  ;;  %v3344_v6 = vld [vmem:[%s4276_s5 + $0x120] sm:$0xff]  }
 0x1ea   :  { %3063 = vmatpush3.bf16.msra.mxu1 %v3331_v4  ;;  %3044 = vmatprep.subr.bf16.mxu0 %v3410_v50 }
 0x1eb   :  { %3064 = vmatprep.subr.bf16.mxu1 %v3410_v50  ;;  %v2751_v13 = vpop.f32.mrb[56].mxu1  ;;  %v1078_v14 = vmax.f32 %v1014_v10, 0.0  ;;  %v1017_v15 = vadd.f32 %v2979_v39, %v888_v11  ;;  %v3885_v16 = vpop.f32.mrb[56].mxu0  ;;  %v3345_v10 = vld [vmem:[%s4276_s5 + $0x160] sm:$0xff]  }
 0x1ec   :  { %v2752_v17 = vpop.f32.mrb[57].mxu1  ;;  %v3887_v18 = vpop.f32.mrb[57].mxu0 }
 0x1ed   :  { %3045 = vmatpush3.bf16.msra.mxu0 %v3332_v9  ;;  %v2753_v21 = vadd.f32 %v2752_v17, %v2751_v13  ;;  %v2754_v23 = vpop.f32.mrb[58].mxu1  ;;  %v1079_v24 = vmax.f32 %v1017_v15, 0.0  ;;  %v3892_v25 = vpop.f32.mrb[58].mxu0  ;;  %v3346_v17 = vld [vmem:[%s4276_s5 + $0x128] sm:$0xff]  }
 0x1ee   :  { %3065 = vmatpush3.bf16.msra.mxu1 %v3333_v12  ;;  %3046 = vmatprep.subr.bf16.mxu0 %v3410_v50  ;;  %v2755_v27 = vpop.f32.mrb[59].mxu1  ;;  %v3898_v28 = vpop.f32.mrb[59].mxu0 }
 0x1ef   :  { %3066 = vmatprep.subr.bf16.mxu1 %v3410_v50  ;;  %v2756_v56 = vadd.f32 %v2755_v27, %v2754_v23  ;;  %v3901_v57 = vpack.c.bf16 %v1079_v24, %v1078_v14  ;;  %v893_v20 = vadd.f32 %v2753_v21, %v3803_v41  ;;  %v3347_v21 = vld [vmem:[%s4276_s5 + $0x168] sm:$0xff]  }
 0x1f1   :  { %3047 = vmatpush3.bf16.msra.mxu0 %v3334_v19  ;;  %v1022_v52 = vadd.f32 %v1021_v62, %v893_v20  ;;  %v896_v58 = vadd.f32 %v2756_v56, %v3803_v41  ;;  %v3348_v56 = vld [vmem:[%s4276_s5 + $0x130] sm:$0xff]  }
 0x1f2   :  { %3067 = vmatpush3.bf16.msra.mxu1 %v3335_v26  ;;  %3072 = vmatprep.subr.bf16.mxu0 %v3410_v50 }
 0x1f3   :  { %3092 = vmatprep.subr.bf16.mxu1 %v3410_v50  ;;  %v2757_v31 = vpop.f32.mrb[60].mxu1  ;;  %v1080_v32 = vmax.f32 %v1022_v52, 0.0  ;;  %v1025_v33 = vadd.f32 %v1024_v46, %v896_v58  ;;  %v3913_v34 = vpop.f32.mrb[60].mxu0 }
 0x1f4   :  { %3049 = vmatmul.mubr.bf16.vlgmr.msra.gmra.mrb[68].mxu0 %v3839_v29  ;;  %v2758_v35 = vpop.f32.mrb[61].mxu1  ;;  %v3916_v36 = vpop.f32.mrb[61].mxu0  ;;  %v3339_v29 = vld [vmem:[%s4276_s5 + $0x148] sm:$0xff]  }
 0x1f5   :  { %3069 = vmatmul.mubr.bf16.vlgmr.msra.gmra.mrb[84].mxu1 %v3849_v44  ;;  %3073 = vmatpush3.bf16.msra.mxu0 %v3336_v22  ;;  %v2759_v38 = vadd.f32 %v2758_v35, %v2757_v31  ;;  %v2760_v39 = vpop.f32.mrb[62].mxu1  ;;  %v1081_v40 = vmax.f32 %v1025_v33, 0.0  ;;  %v3922_v42 = vpop.f32.mrb[62].mxu0  ;;  %v3349_v22 = vld [vmem:[%s4276_s5 + $0x170] sm:$0xff]   ;;  %v3350_v35 = vld [vmem:[%s4276_s5 + $0x138] sm:$0xff]  }
 0x1f6   :  { %3093 = vmatpush3.bf16.msra.mxu1 %v3337_v30  ;;  %3074 = vmatprep.subr.bf16.mxu0 %v3410_v50  ;;  %v2761_v43 = vpop.f32.mrb[63].mxu1  ;;  %v3928_v45 = vpop.f32.mrb[63].mxu0 }
 0x1f7   :  { %3094 = vmatprep.subr.bf16.mxu1 %v3410_v50  ;;  %v2762_v44 = vadd.f32 %v2761_v43, %v2760_v39  ;;  %v901_v47 = vadd.f32 %v2759_v38, %v3803_v41  ;;  %v3932_v48 = vpack.c.bf16 %v1081_v40, %v1080_v32  ;;  %3088 = vmatprep.mubr.msk.bf16.mxu0 %vm3411_vm3, %v3410_v50  ;;  %v3351_v38 = vld [vmem:[%s4276_s5 + $0x178] sm:$0xff]  }
 0x1f8   :  { %3108 = vmatprep.mubr.msk.bf16.mxu1 %vm3411_vm3, %v3410_v50 }
 0x1f9   :  { %3075 = vmatpush3.bf16.msra.mxu0 %v3338_v37  ;;  %v1030_v51 = vadd.f32 %v3861_v55, %v901_v47  ;;  %v904_v53 = vadd.f32 %v2762_v44, %v3803_v41  ;;  %v3342_v55 = vld [vmem:[%s4276_s5 + $0x118] sm:$0xff]   ;;  %v3352_v44 = vld [vmem:[%s4276_s5 + $0x180] sm:$0xff]  }
 0x1fa   :  { %3095 = vmatpush3.bf16.msra.mxu1 %v3339_v29  ;;  %3076 = vmatprep.subr.bf16.mxu0 %v3410_v50  ;;  %v3353_v47 = vld [vmem:[%s4276_s5 + $0x1c0] sm:$0xff]  }
 0x1fb   :  { %3096 = vmatprep.subr.bf16.mxu1 %v3410_v50  ;;  %v2763_v60 = vpop.f32.mrb[64].mxu1  ;;  %v1082_v54 = vmax.f32 %v1030_v51, 0.0  ;;  %v1033_v61 = vadd.f32 %v3866_v3, %v904_v53 }
 0x1fc   :  { %v2764_v62 = vpop.f32.mrb[65].mxu1 }
 0x1fd   :  { %3077 = vmatpush3.bf16.msra.mxu0 %v3340_v49  ;;  %v2765_v63 = vadd.f32 %v2764_v62, %v2763_v60  ;;  %v2766_v0 = vpop.f32.mrb[66].mxu1  ;;  %v1083_v1 = vmax.f32 %v1033_v61, 0.0  ;;  %v3354_v61 = vld [vmem:[%s4276_s5 + $0x188] sm:$0xff]  }
 0x1fe   :  { %3097 = vmatpush3.bf16.msra.mxu1 %v3341_v59  ;;  %3078 = vmatprep.subr.bf16.mxu0 %v3410_v50  ;;  %v2767_v4 = vpop.f32.mrb[67].mxu1 }
 0x1ff   :  { %3098 = vmatprep.subr.bf16.mxu1 %v3410_v50  ;;  %v2768_v3 = vadd.f32 %v2767_v4, %v2766_v0  ;;  %v3957_v5 = vpack.c.bf16 %v1083_v1, %v1082_v54  ;;  %v909_v46 = vadd.f32 %v2765_v63, %v3803_v41  ;;  %v3356_v1 = vld [vmem:[%s4276_s5 + $0x190] sm:$0xff]  }
 0x201   :  { %3079 = vmatpush3.bf16.msra.mxu0 %v3342_v55  ;;  %v1038_v7 = vadd.f32 %v3887_v18, %v909_v46  ;;  %v912_v9 = vadd.f32 %v2768_v3, %v3803_v41  ;;  %v3359_v46 = vld [vmem:[%s4276_s5 + $0x1d8] sm:$0xff]  }
 0x202   :  { %3099 = vmatpush3.bf16.msra.mxu1 %v3343_v2  ;;  %3080 = vmatprep.subr.bf16.mxu0 %v3410_v50  ;;  %v3357_v2 = vld [vmem:[%s4276_s5 + $0x1d0] sm:$0xff]  }
 0x203   :  { %3100 = vmatprep.subr.bf16.mxu1 %v3410_v50  ;;  %v2769_v11 = vpop.f32.mrb[68].mxu1  ;;  %v1084_v12 = vmax.f32 %v1038_v7, 0.0  ;;  %v1041_v13 = vadd.f32 %v3898_v28, %v912_v9  ;;  %v3361_v7 = vld [vmem:[%s4276_s5 + $0x1e0] sm:$0xff]   ;;  %v3362_v9 = vld [vmem:[%s4276_s5 + $0x1a8] sm:$0xff]  }
 0x204   :  { %v2770_v14 = vpop.f32.mrb[69].mxu1 }
 0x205   :  { %3081 = vmatpush3.bf16.msra.mxu0 %v3344_v6  ;;  %v2771_v15 = vadd.f32 %v2770_v14, %v2769_v11  ;;  %v2772_v18 = vpop.f32.mrb[70].mxu1  ;;  %v1085_v19 = vmax.f32 %v1041_v13, 0.0  ;;  %v3364_v11 = vld [vmem:[%s4276_s5 + $0x1b0] sm:$0xff]   ;;  %v3366_v13 = vld [vmem:[%s4276_s5 + $0x1b8] sm:$0xff]  }
 0x206   :  { %3101 = vmatpush3.bf16.msra.mxu1 %v3345_v10  ;;  %3082 = vmatprep.subr.bf16.mxu0 %v3410_v50  ;;  %v2773_v23 = vpop.f32.mrb[71].mxu1  ;;  %v3363_v10 = vld [vmem:[%s4276_s5 + $0x1e8] sm:$0xff]   ;;  %v3367_v14 = vld [vmem:[%s4276_s5 + $0x1f8] sm:$0xff]  }
 0x207   :  { %3102 = vmatprep.subr.bf16.mxu1 %v3410_v50  ;;  %v2774_v24 = vadd.f32 %v2773_v23, %v2772_v18  ;;  %v917_v26 = vadd.f32 %v2771_v15, %v3803_v41  ;;  %v3980_v27 = vpack.c.bf16 %v1085_v19, %v1084_v12  ;;  %v3365_v12 = vld [vmem:[%s4276_s5 + $0x1f0] sm:$0xff]   ;;  %v3368_v15 = vld [vmem:[%s4276_s5 + $0x200] sm:$0xff]   ;;  %v3370_v18 = vld [vmem:[%s4276_s5 + $0x208] sm:$0xff]  }
 0x208   :  { %v3371_v19 = vld [vmem:[%s4276_s5 + $0x248] sm:$0xff]   ;;  %v3375_v23 = vld [vmem:[%s4276_s5 + $0x258] sm:$0xff]  }
 0x209   :  { %3083 = vmatpush3.bf16.msra.mxu0 %v3346_v17  ;;  %v1046_v28 = vadd.f32 %v3885_v16, %v917_v26  ;;  %v920_v20 = vadd.f32 %v2774_v24, %v3803_v41  ;;  %v3369_v17 = vld [vmem:[%s4276_s5 + $0x240] sm:$0xff]  }
 0x20a   :  { %3103 = vmatpush3.bf16.msra.mxu1 %v3347_v21  ;;  %3084 = vmatprep.subr.bf16.mxu0 %v3410_v50  ;;  %v3374_v21 = vld [vmem:[%s4276_s5 + $0x218] sm:$0xff]   ;;  %v3376_v24 = vld [vmem:[%s4276_s5 + $0x220] sm:$0xff]  }
 0x20b   :  { %v2775_v52 = vpop.f32.mrb[72].mxu1  ;;  %v1086_v58 = vmax.f32 %v1046_v28, 0.0  ;;  %3104 = vmatprep.subr.bf16.mxu1 %v3410_v50  ;;  %v1049_v30 = vadd.f32 %v3892_v25, %v920_v20  ;;  %v3377_v26 = vld [vmem:[%s4276_s5 + $0x260] sm:$0xff]   ;;  %v3378_v28 = vld [vmem:[%s4276_s5 + $0x228] sm:$0xff]   ;;  %v3380_v20 = vld [vmem:[%s4276_s5 + $0x230] sm:$0xff]  }
 0x20c   :  { %v2776_v16 = vpop.f32.mrb[73].mxu1 }
 0x20d   :  { %v2777_v31 = vadd.f32 %v2776_v16, %v2775_v52  ;;  %3085 = vmatpush3.bf16.msra.mxu0 %v3348_v56  ;;  %v2778_v32 = vpop.f32.mrb[74].mxu1  ;;  %v1087_v33 = vmax.f32 %v1049_v30, 0.0  ;;  %v3379_v56 = vld [vmem:[%s4276_s5 + $0x268] sm:$0xff]   ;;  %v3382_v52 = vld [vmem:[%s4276_s5 + $0x238] sm:$0xff]   ;;  %v3384_v30 = vld [vmem:[%s4276_s5 + $0x280] sm:$0xff]  }
 0x20e   :  { %3105 = vmatpush3.bf16.msra.mxu1 %v3349_v22  ;;  %v2779_v37 = vpop.f32.mrb[75].mxu1  ;;  %3086 = vmatprep.subr.bf16.mxu0 %v3410_v50  ;;  %v3381_v22 = vld [vmem:[%s4276_s5 + $0x270] sm:$0xff]   ;;  %v3385_v16 = vld [vmem:[%s4276_s5 + $0x2c0] sm:$0xff]  }
 0x20f   :  { %v4000_v39 = vpack.c.bf16 %v1087_v33, %v1086_v58  ;;  %v2780_v25 = vadd.f32 %v2779_v37, %v2778_v32  ;;  %v925_v40 = vadd.f32 %v2777_v31, %v3803_v41  ;;  %3106 = vmatprep.subr.bf16.mxu1 %v3410_v50  ;;  %v3383_v58 = vld [vmem:[%s4276_s5 + $0x278] sm:$0xff]   ;;  %v3386_v31 = vld [vmem:[%s4276_s5 + $0x288] sm:$0xff]   ;;  %v3389_v33 = vld [vmem:[%s4276_s5 + $0x2d0] sm:$0xff]  }
 0x210   :  { %v3387_v32 = vld [vmem:[%s4276_s5 + $0x2c8] sm:$0xff]   ;;  %v3391_v37 = vld [vmem:[%s4276_s5 + $0x2d8] sm:$0xff]  }
 0x211   :  { %v1054_v29 = vadd.f32 %v3916_v36, %v925_v40  ;;  %3087 = vmatpush3.bf16.msra.mxu0 %v3350_v35  ;;  %v928_v43 = vadd.f32 %v2780_v25, %v3803_v41  ;;  %v3390_v35 = vld [vmem:[%s4276_s5 + $0x298] sm:$0xff]   ;;  %v3394_v25 = vld [vmem:[%s4276_s5 + $0x2a8] sm:$0xff]  }
 0x212   :  { %3107 = vmatpush3.bf16.msra.mxu1 %v3351_v38  ;;  %3112 = vmatprep.subr.bf16.mxu0 %v3410_v50  ;;  %v3392_v38 = vld [vmem:[%s4276_s5 + $0x2a0] sm:$0xff]   ;;  %v3395_v40 = vld [vmem:[%s4276_s5 + $0x2e8] sm:$0xff]  }
 0x213   :  { %v1057_v49 = vadd.f32 %v3928_v45, %v928_v43  ;;  %v2781_v51 = vpop.f32.mrb[76].mxu1  ;;  %3132 = vmatprep.subr.bf16.mxu1 %v3410_v50  ;;  %v1088_v53 = vmax.f32 %v1054_v29, 0.0  ;;  %v3396_v29 = vld [vmem:[%s4276_s5 + $0x2b0] sm:$0xff]  }
 0x214   :  { %3089 = vmatmul.mubr.bf16.vlgmr.msra.gmra.mrb[72].mxu0 %v3874_v8  ;;  %v2782_v36 = vpop.f32.mrb[77].mxu1  ;;  %v3355_v8 = vld [vmem:[%s4276_s5 + $0x1c8] sm:$0xff]   ;;  %v3397_v43 = vld [vmem:[%s4276_s5 + $0x2f0] sm:$0xff]  }
 0x215   :  { %v1089_v59 = vmax.f32 %v1057_v49, 0.0  ;;  %v2783_v60 = vadd.f32 %v2782_v36, %v2781_v51  ;;  %3109 = vmatmul.mubr.bf16.vlgmr.msra.gmra.mrb[88].mxu1 %v3901_v57  ;;  %3113 = vmatpush3.bf16.msra.mxu0 %v3352_v44  ;;  %v2784_v54 = vpop.f32.mrb[78].mxu1  ;;  %v3398_v44 = vld [vmem:[%s4276_s5 + $0x2b8] sm:$0xff]  }
 0x216   :  { %3133 = vmatpush3.bf16.msra.mxu1 %v3353_v47  ;;  %v2785_v62 = vpop.f32.mrb[79].mxu1  ;;  %3114 = vmatprep.subr.bf16.mxu0 %v3410_v50  ;;  %v3399_v47 = vld [vmem:[%s4276_s5 + $0x2f8] sm:$0xff]  }
 0x217   :  { %v4024_v45 = vpack.c.bf16 %v1089_v59, %v1088_v53  ;;  %v933_v55 = vadd.f32 %v2783_v60, %v3803_v41  ;;  %v2786_v63 = vadd.f32 %v2785_v62, %v2784_v54  ;;  %3134 = vmatprep.subr.bf16.mxu1 %v3410_v50  ;;  %3128 = vmatprep.mubr.msk.bf16.mxu0 %vm3411_vm3, %v3410_v50 }
 0x218   :  { %3148 = vmatprep.mubr.msk.bf16.mxu1 %vm3411_vm3, %v3410_v50 }
 0x219   :  { %v1062_v57 = vadd.f32 %v3913_v34, %v933_v55  ;;  %v936_v0 = vadd.f32 %v2786_v63, %v3803_v41  ;;  %3115 = vmatpush3.bf16.msra.mxu0 %v3354_v61  ;;  %v3358_v41 = vld [vmem:[%s4276_s5 + $0x198] sm:$0xff]   ;;  %v3400_v55 = vld [vmem:[%s4279_s7] sm:$0xff]   ;;  %v3402_v63 = vld [vmem:[%s4279_s7 + $0x10] sm:$0xff]  }
 0x21a   :  { %3135 = vmatpush3.bf16.msra.mxu1 %v3355_v8  ;;  %3116 = vmatprep.subr.bf16.mxu0 %v3410_v50 }
 0x21b   :  { %v1065_v4 = vadd.f32 %v3922_v42, %v936_v0  ;;  %3136 = vmatprep.subr.bf16.mxu1 %v3410_v50  ;;  %v1090_v3 = vmax.f32 %v1062_v57, 0.0  ;;  %v3360_v42 = vld [vmem:[%s4276_s5 + $0x1a0] sm:$0xff]   ;;  %v3403_v57 = vld [vmem:[%s4279_s7 + $0x18] sm:$0xff]  }
 0x21c   :  { %v3404_v0 = vld [vmem:[%s4279_s7 + $0x20] sm:$0xff]  }
 0x21d   :  { %v1091_v34 = vmax.f32 %v1065_v4, 0.0  ;;  %3117 = vmatpush3.bf16.msra.mxu0 %v3356_v1  ;;  %v3405_v1 = vld [vmem:[%s4279_s7 + $0x28] sm:$0xff]  }
 0x21e   :  { %3137 = vmatpush3.bf16.msra.mxu1 %v3357_v2  ;;  %3118 = vmatprep.subr.bf16.mxu0 %v3410_v50 }
 0x21f   :  { %v4050_v6 = vpack.c.bf16 %v1091_v34, %v1090_v3  ;;  %3138 = vmatprep.subr.bf16.mxu1 %v3410_v50 }
 0x221   :  { %3119 = vmatpush3.bf16.msra.mxu0 %v3358_v41 }
 0x222   :  { %3139 = vmatpush3.bf16.msra.mxu1 %v3359_v46  ;;  %3120 = vmatprep.subr.bf16.mxu0 %v3410_v50 }
 0x223   :  { %3140 = vmatprep.subr.bf16.mxu1 %v3410_v50 }
 0x225   :  { %3121 = vmatpush3.bf16.msra.mxu0 %v3360_v42 }
 0x226   :  { %3141 = vmatpush3.bf16.msra.mxu1 %v3361_v7  ;;  %3122 = vmatprep.subr.bf16.mxu0 %v3410_v50 }
 0x227   :  { %3142 = vmatprep.subr.bf16.mxu1 %v3410_v50 }
 0x229   :  { %3123 = vmatpush3.bf16.msra.mxu0 %v3362_v9 }
 0x22a   :  { %3143 = vmatpush3.bf16.msra.mxu1 %v3363_v10  ;;  %3124 = vmatprep.subr.bf16.mxu0 %v3410_v50 }
 0x22b   :  { %3144 = vmatprep.subr.bf16.mxu1 %v3410_v50 }
 0x22d   :  { %3125 = vmatpush3.bf16.msra.mxu0 %v3364_v11 }
 0x22e   :  { %3145 = vmatpush3.bf16.msra.mxu1 %v3365_v12  ;;  %3126 = vmatprep.subr.bf16.mxu0 %v3410_v50 }
 0x22f   :  { %3146 = vmatprep.subr.bf16.mxu1 %v3410_v50 }
 0x231   :  { %3127 = vmatpush3.bf16.msra.mxu0 %v3366_v13  ;;  %v3407_v13 = vld [vmem:[%s4279_s7 + $0x38] sm:$0xff]  }
 0x232   :  { %3147 = vmatpush3.bf16.msra.mxu1 %v3367_v14  ;;  %3152 = vmatprep.subr.bf16.mxu0 %v3410_v50 }
 0x233   :  { %3172 = vmatprep.subr.bf16.mxu1 %v3410_v50 }
 0x234   :  { %3129 = vmatmul.mubr.bf16.vlgmr.msra.gmra.mrb[76].mxu0 %v3932_v48  ;;  %v3372_v48 = vld [vmem:[%s4276_s5 + $0x210] sm:$0xff]  }
 0x235   :  { %3149 = vmatmul.mubr.bf16.vlgmr.msra.gmra.mrb[92].mxu1 %v3957_v5  ;;  %3153 = vmatpush3.bf16.msra.mxu0 %v3368_v15  ;;  %v3373_v5 = vld [vmem:[%s4276_s5 + $0x250] sm:$0xff]  }
 0x236   :  { %3173 = vmatpush3.bf16.msra.mxu1 %v3369_v17  ;;  %3154 = vmatprep.subr.bf16.mxu0 %v3410_v50 }
 0x237   :  { %3174 = vmatprep.subr.bf16.mxu1 %v3410_v50  ;;  %3168 = vmatprep.mubr.msk.bf16.mxu0 %vm3411_vm3, %v3410_v50 }
 0x238   :  { %3188 = vmatprep.mubr.msk.bf16.mxu1 %vm3411_vm3, %v3410_v50 }
 0x239   :  { %3155 = vmatpush3.bf16.msra.mxu0 %v3370_v18 }
 0x23a   :  { %3175 = vmatpush3.bf16.msra.mxu1 %v3371_v19  ;;  %3156 = vmatprep.subr.bf16.mxu0 %v3410_v50 }
 0x23b   :  { %3176 = vmatprep.subr.bf16.mxu1 %v3410_v50 }
 0x23d   :  { %3157 = vmatpush3.bf16.msra.mxu0 %v3372_v48 }
 0x23e   :  { %3177 = vmatpush3.bf16.msra.mxu1 %v3373_v5  ;;  %3158 = vmatprep.subr.bf16.mxu0 %v3410_v50 }
 0x23f   :  { %3178 = vmatprep.subr.bf16.mxu1 %v3410_v50 }
 0x241   :  { %3159 = vmatpush3.bf16.msra.mxu0 %v3374_v21 }
 0x242   :  { %3179 = vmatpush3.bf16.msra.mxu1 %v3375_v23  ;;  %3160 = vmatprep.subr.bf16.mxu0 %v3410_v50 }
 0x243   :  { %3180 = vmatprep.subr.bf16.mxu1 %v3410_v50 }
 0x245   :  { %3161 = vmatpush3.bf16.msra.mxu0 %v3376_v24 }
 0x246   :  { %3181 = vmatpush3.bf16.msra.mxu1 %v3377_v26  ;;  %3162 = vmatprep.subr.bf16.mxu0 %v3410_v50 }
 0x247   :  { %3182 = vmatprep.subr.bf16.mxu1 %v3410_v50 }
 0x249   :  { %3163 = vmatpush3.bf16.msra.mxu0 %v3378_v28 }
 0x24a   :  { %3183 = vmatpush3.bf16.msra.mxu1 %v3379_v56  ;;  %3164 = vmatprep.subr.bf16.mxu0 %v3410_v50 }
 0x24b   :  { %3184 = vmatprep.subr.bf16.mxu1 %v3410_v50 }
 0x24d   :  { %3165 = vmatpush3.bf16.msra.mxu0 %v3380_v20 }
 0x24e   :  { %3185 = vmatpush3.bf16.msra.mxu1 %v3381_v22  ;;  %3166 = vmatprep.subr.bf16.mxu0 %v3410_v50 }
 0x24f   :  { %3186 = vmatprep.subr.bf16.mxu1 %v3410_v50 }
 0x251   :  { %3167 = vmatpush3.bf16.msra.mxu0 %v3382_v52 }
 0x252   :  { %3187 = vmatpush3.bf16.msra.mxu1 %v3383_v58  ;;  %3192 = vmatprep.subr.bf16.mxu0 %v3410_v50 }
 0x253   :  { %3212 = vmatprep.subr.bf16.mxu1 %v3410_v50 }
 0x254   :  { %3169 = vmatmul.mubr.bf16.vlgmr.msra.gmra.mrb[80].mxu0 %v3980_v27  ;;  %v3388_v27 = vld [vmem:[%s4276_s5 + $0x290] sm:$0xff]  }
 0x255   :  { %3189 = vmatmul.mubr.bf16.vlgmr.msra.gmra.mrb[96].mxu1 %v4000_v39  ;;  %3193 = vmatpush3.bf16.msra.mxu0 %v3384_v30  ;;  %v3393_v39 = vld [vmem:[%s4276_s5 + $0x2e0] sm:$0xff]  }
 0x256   :  { %3213 = vmatpush3.bf16.msra.mxu1 %v3385_v16  ;;  %3194 = vmatprep.subr.bf16.mxu0 %v3410_v50 }
 0x257   :  { %3214 = vmatprep.subr.bf16.mxu1 %v3410_v50  ;;  %3208 = vmatprep.mubr.msk.bf16.mxu0 %vm3411_vm3, %v3410_v50 }
 0x258   :  { %3228 = vmatprep.mubr.msk.bf16.mxu1 %vm3411_vm3, %v3410_v50 }
 0x259   :  { %3195 = vmatpush3.bf16.msra.mxu0 %v3386_v31 }
 0x25a   :  { %3215 = vmatpush3.bf16.msra.mxu1 %v3387_v32  ;;  %3196 = vmatprep.subr.bf16.mxu0 %v3410_v50 }
 0x25b   :  { %3216 = vmatprep.subr.bf16.mxu1 %v3410_v50 }
 0x25d   :  { %3197 = vmatpush3.bf16.msra.mxu0 %v3388_v27 }
 0x25e   :  { %3217 = vmatpush3.bf16.msra.mxu1 %v3389_v33  ;;  %3198 = vmatprep.subr.bf16.mxu0 %v3410_v50 }
 0x25f   :  { %3218 = vmatprep.subr.bf16.mxu1 %v3410_v50 }
 0x261   :  { %3199 = vmatpush3.bf16.msra.mxu0 %v3390_v35 }
 0x262   :  { %3219 = vmatpush3.bf16.msra.mxu1 %v3391_v37  ;;  %3200 = vmatprep.subr.bf16.mxu0 %v3410_v50 }
 0x263   :  { %3220 = vmatprep.subr.bf16.mxu1 %v3410_v50 }
 0x265   :  { %3201 = vmatpush3.bf16.msra.mxu0 %v3392_v38 }
 0x266   :  { %3221 = vmatpush3.bf16.msra.mxu1 %v3393_v39  ;;  %3202 = vmatprep.subr.bf16.mxu0 %v3410_v50 }
 0x267   :  { %3222 = vmatprep.subr.bf16.mxu1 %v3410_v50 }
 0x269   :  { %3203 = vmatpush3.bf16.msra.mxu0 %v3394_v25 }
 0x26a   :  { %3223 = vmatpush3.bf16.msra.mxu1 %v3395_v40  ;;  %3204 = vmatprep.subr.bf16.mxu0 %v3410_v50 }
 0x26b   :  { %3224 = vmatprep.subr.bf16.mxu1 %v3410_v50 }
 0x26d   :  { %3205 = vmatpush3.bf16.msra.mxu0 %v3396_v29 }
 0x26e   :  { %3225 = vmatpush3.bf16.msra.mxu1 %v3397_v43  ;;  %3206 = vmatprep.subr.bf16.mxu0 %v3410_v50 }
 0x26f   :  { %3226 = vmatprep.subr.bf16.mxu1 %v3410_v50 }
 0x271   :  { %3207 = vmatpush3.bf16.msra.mxu0 %v3398_v44 }
 0x272   :  { %3227 = vmatpush3.bf16.msra.mxu1 %v3399_v47  ;;  %3232 = vmatprep.subr.bf16.mxu0 %v3410_v50 }
 0x274   :  { %3209 = vmatmul.mubr.bf16.vlgmr.msra.gmra.mrb[84].mxu0 %v4024_v45  ;;  %v3401_v45 = vld [vmem:[%s4279_s7 + $0x8] sm:$0xff]  }
 0x275   :  { %3229 = vmatmul.mubr.bf16.vlgmr.msra.gmra.mrb[100].mxu1 %v4050_v6  ;;  %3248 = vmatprep.mubr.msk.bf16.mxu0 %vm3411_vm3, %v3410_v50  ;;  %v3406_v6 = vld [vmem:[%s4279_s7 + $0x30] sm:$0xff]  }
 0x276   :  { %3233 = vmatpush3.bf16.msra.mxu0 %v3400_v55 }
 0x277   :  { %3234 = vmatprep.subr.bf16.mxu0 %v3410_v50 }
 0x27a   :  { %3235 = vmatpush3.bf16.msra.mxu0 %v3401_v45 }
 0x27b   :  { %3236 = vmatprep.subr.bf16.mxu0 %v3410_v50 }
 0x27e   :  { %3237 = vmatpush3.bf16.msra.mxu0 %v3402_v63  ;;  %v2675_v63 = vld [vmem:[%s4280_s6] ss:$0 sm:$0xff] }
 0x27f   :  { %3238 = vmatprep.subr.bf16.mxu0 %v3410_v50 }
 0x282   :  { %3239 = vmatpush3.bf16.msra.mxu0 %v3403_v57 }
 0x283   :  { %3240 = vmatprep.subr.bf16.mxu0 %v3410_v50 }
 0x286   :  { %3241 = vmatpush3.bf16.msra.mxu0 %v3404_v0 }
 0x287   :  { %3242 = vmatprep.subr.bf16.mxu0 %v3410_v50 }
 0x28a   :  { %3243 = vmatpush3.bf16.msra.mxu0 %v3405_v1 }
 0x28b   :  { %3244 = vmatprep.subr.bf16.mxu0 %v3410_v50 }
 0x28e   :  { %3245 = vmatpush3.bf16.msra.mxu0 %v3406_v6 }
 0x28f   :  { %3246 = vmatprep.subr.bf16.mxu0 %v3410_v50 }
 0x292   :  { %3247 = vmatpush3.bf16.msra.mxu0 %v3407_v13 }
 0x2a7   :  { %v1218_v49 = vpop.f32.mrb[64].mxu0 }
 0x2a8   :  { %v3010_v51 = vpop.f32.mrb[65].mxu0  ;;  %v1307_v36 = vpop.f32.mrb[80].mxu1 }
 0x2a9   :  { %v1308_v53 = vadd.f32 %v1307_v36, %v1218_v49  ;;  %v1221_v59 = vpop.f32.mrb[66].mxu0  ;;  %v3030_v60 = vpop.f32.mrb[81].mxu1 }
 0x2aa   :  { %v3011_v54 = vpop.f32.mrb[67].mxu0  ;;  %v1310_v61 = vpop.f32.mrb[82].mxu1 }
 0x2ab   :  { %v1311_v62 = vadd.f32 %v1310_v61, %v1221_v59  ;;  %v3031_v8 = vpop.f32.mrb[83].mxu1 }
 0x2c7   :  { %v1412_v2 = vpop.f32.mrb[68].mxu0 }
 0x2c8   :  { %v1419_v4 = vadd.f32 %v1412_v2, %v1308_v53  ;;  %v3050_v3 = vpop.f32.mrb[69].mxu0  ;;  %v1519_v34 = vpop.f32.mrb[84].mxu1 }
 0x2c9   :  { %v1415_v41 = vpop.f32.mrb[70].mxu0  ;;  %v3070_v46 = vpop.f32.mrb[85].mxu1  ;;  %v2676_v3 = vld [vmem:[%s4281_s8] ss:$0 sm:$0xff] }
 0x2ca   :  { %v1526_v42 = vadd.f32 %v1519_v34, %v1419_v4  ;;  %v1420_v7 = vadd.f32 %v1415_v41, %v1311_v62  ;;  %v3051_v9 = vpop.f32.mrb[71].mxu0  ;;  %v1522_v10 = vpop.f32.mrb[86].mxu1 }
 0x2cb   :  { %v3071_v11 = vpop.f32.mrb[87].mxu1 }
 0x2cc   :  { %v1527_v12 = vadd.f32 %v1522_v10, %v1420_v7 }
 0x2e7   :  { %v1626_v14 = vpop.f32.mrb[72].mxu0 }
 0x2e8   :  { %v1633_v15 = vadd.f32 %v1626_v14, %v1526_v42  ;;  %v3090_v17 = vpop.f32.mrb[73].mxu0  ;;  %v1733_v18 = vpop.f32.mrb[88].mxu1 }
 0x2e9   :  { %v1629_v19 = vpop.f32.mrb[74].mxu0  ;;  %v3110_v48 = vpop.f32.mrb[89].mxu1 }
 0x2ea   :  { %v1740_v5 = vadd.f32 %v1733_v18, %v1633_v15  ;;  %v1634_v21 = vadd.f32 %v1629_v19, %v1527_v12  ;;  %v3091_v23 = vpop.f32.mrb[75].mxu0  ;;  %v1736_v24 = vpop.f32.mrb[90].mxu1 }
 0x2eb   :  { %v3111_v26 = vpop.f32.mrb[91].mxu1 }
 0x2ec   :  { %v1741_v28 = vadd.f32 %v1736_v24, %v1634_v21 }
 0x307   :  { %v1840_v56 = vpop.f32.mrb[76].mxu0 }
 0x308   :  { %v1847_v20 = vadd.f32 %v1840_v56, %v1740_v5  ;;  %v3130_v50 = vpop.f32.mrb[77].mxu0  ;;  %v1947_v22 = vpop.f32.mrb[92].mxu1 }
 0x309   :  { %v1843_v52 = vpop.f32.mrb[78].mxu0  ;;  %v3150_v58 = vpop.f32.mrb[93].mxu1 }
 0x30a   :  { %v1954_v30 = vadd.f32 %v1947_v22, %v1847_v20  ;;  %v1848_v16 = vadd.f32 %v1843_v52, %v1741_v28  ;;  %v3131_v31 = vpop.f32.mrb[79].mxu0  ;;  %v1950_v32 = vpop.f32.mrb[94].mxu1 }
 0x30b   :  { %v3151_v27 = vpop.f32.mrb[95].mxu1 }
 0x30c   :  { %v1955_v33 = vadd.f32 %v1950_v32, %v1848_v16 }
 0x327   :  { %v2054_v35 = vpop.f32.mrb[80].mxu0 }
 0x328   :  { %v2061_v37 = vadd.f32 %v2054_v35, %v1954_v30  ;;  %v3170_v38 = vpop.f32.mrb[81].mxu0  ;;  %v2161_v39 = vpop.f32.mrb[96].mxu1 }
 0x329   :  { %v2057_v25 = vpop.f32.mrb[82].mxu0  ;;  %v3190_v40 = vpop.f32.mrb[97].mxu1 }
 0x32a   :  { %v2168_v29 = vadd.f32 %v2161_v39, %v2061_v37  ;;  %v2062_v43 = vadd.f32 %v2057_v25, %v1955_v33  ;;  %v3171_v44 = vpop.f32.mrb[83].mxu0  ;;  %v2164_v47 = vpop.f32.mrb[98].mxu1 }
 0x32b   :  { %v3191_v49 = vpop.f32.mrb[99].mxu1 }
 0x32c   :  { %v2169_v51 = vadd.f32 %v2164_v47, %v2062_v43 }
 0x347   :  { %v2268_v36 = vpop.f32.mrb[84].mxu0 }
 0x348   :  { %v2275_v53 = vadd.f32 %v2268_v36, %v2168_v29  ;;  %v3210_v59 = vpop.f32.mrb[85].mxu0  ;;  %v2375_v60 = vpop.f32.mrb[100].mxu1 }
 0x349   :  { %v2271_v54 = vpop.f32.mrb[86].mxu0  ;;  %v3230_v61 = vpop.f32.mrb[101].mxu1 }
 0x34a   :  { %v2382_v62 = vadd.f32 %v2375_v60, %v2275_v53  ;;  %v2276_v8 = vadd.f32 %v2271_v54, %v2169_v51  ;;  %v3211_v55 = vpop.f32.mrb[87].mxu0  ;;  %v2378_v45 = vpop.f32.mrb[102].mxu1 }
 0x34b   :  { %v3231_v57 = vpop.f32.mrb[103].mxu1 }
 0x34c   :  { %v2383_v0 = vadd.f32 %v2378_v45, %v2276_v8  ;;  %v2391_v1 = vadd.f32 %v2675_v63, %v2382_v62 }
 0x34e   :  { %v2392_v2 = vadd.f32 %v2675_v63, %v2383_v0 }
 0x350   :  { %v2393_v4 = vpack.c.bf16 %v2392_v2, %v2391_v1 }
 0x352   :  { %3249 = vmatmul.mubr.bf16.vlgmr.msra.gmra.mrb[88].mxu0 %v2393_v4 }
 0x425   :  { %v2499_v34 = vpop.f32.mrb[88].mxu0 }
 0x426   :  { %v2500_v41 = vadd.f32 %v2676_v3, %v2499_v34  ;;  %v3250_v46 = vpop.f32.mrb[89].mxu0 }
 0x427   :  { %v2502_v6 = vpop.f32.mrb[90].mxu0 }
 0x428   :  { %2506 = vst [vmem:[%s4282_s9] sm:$0xff] %v2500_v41  ;;  %v2503_v42 = vadd.f32 %v2676_v3, %v2502_v6  ;;  %v3251_v7 = vpop.f32.mrb[91].mxu0 }
 0x42a   :  { %2507 = vst [vmem:[%s4282_s9 + $0x8] sm:$0xff] %v2503_v42 }

</bundles_post_ra>
